<compile_context>
chip_gen: v6e
topology: v6e:2x2x1
jax: 0.10.0
libtpu: 0.0.40
codegen_flags: <defaults>
</compile_context>

<pallas_src>
import functools

import jax
import jax.numpy as jnp
from jax.experimental import pallas as pl
from jax.experimental.pallas import tpu as pltpu


def _stack_gcn_kernel(d_ref, aw_ref, as_ref, wl_ref, wr_ref, bl_ref, br_ref,
                      o_ref, *, wing_rows, num_of_kernel):
    # Static sublane slices of the resident (M*N, B*C) activation slab.
    wing = d_ref[:wing_rows, :]            # ((M-1)*N, B*C)
    x = d_ref[wing_rows:, :]               # (N, B*C)   initial data
    res = x                                # residual (data[-N:])

    # adj @ cat(wing, x) == adj[:, :wing] @ wing + adj[:, wing:] @ x ;
    # the wing term is invariant across the stacked gcn/glu iterations.
    wing_mix = jnp.dot(aw_ref[...], wing, preferred_element_type=jnp.float32)

    acc = None
    for k in range(num_of_kernel):         # small static trip count -> unrolled
        mixed = wing_mix + jnp.dot(as_ref[...], x,
                                   preferred_element_type=jnp.float32)
        # GLU with block-diagonal kron(I_B, W) weights: contracts the C axis
        # for every batch element in one lane-dense (N, B*C) dot.
        lhs = jnp.dot(mixed, wl_ref[k],
                      preferred_element_type=jnp.float32) + bl_ref[k]
        rhs = jnp.dot(mixed, wr_ref[k],
                      preferred_element_type=jnp.float32) + br_ref[k]
        x = lhs * jax.nn.sigmoid(rhs)
        acc = x if acc is None else jnp.maximum(acc, x)   # running max

    o_ref[...] = (acc + res).astype(o_ref.dtype)


def _expand_glu_params(weights, biases, batch):
    """Expand per-channel GLU params to the batch-in-lanes layout.

    weights: (K, C, 2C), biases: (K, 1, 2C)
    returns wl_blk, wr_blk: (K, B*C, B*C) = kron(I_B, W_half) per kernel,
            bl_blk, br_blk: (K, 1, B*C)   = bias_half tiled over batch.
    Weight-only; in a real model this is hoisted out of the per-step call.
    """
    K, C, _ = weights.shape
    eye_b = jnp.eye(batch, dtype=weights.dtype)
    w_l, w_r = weights[:, :, :C], weights[:, :, C:]
    wl_blk = jnp.einsum('ab,kcd->kacbd', eye_b, w_l).reshape(K, batch * C, batch * C)
    wr_blk = jnp.einsum('ab,kcd->kacbd', eye_b, w_r).reshape(K, batch * C, batch * C)
    bl_blk = jnp.tile(biases[:, :, :C], (1, 1, batch))
    br_blk = jnp.tile(biases[:, :, C:], (1, 1, batch))
    return wl_blk, wr_blk, bl_blk, br_blk


def stack_gcn_forward(data, adj, weights, biases, num_of_vertices, merge_step):
    """Pallas implementation of stack_gcn.forward() (eval semantics).

    data:    (merge_step*N, B, C) float32
    adj:     (N, merge_step*N)    float32
    weights: (K, C, 2C)           one glu weight per gcn_operation
    biases:  (K, 1, 2C)
    returns: (N, B, C)            float32
    """
    N, M = num_of_vertices, merge_step
    MN, B, C = data.shape
    assert MN == M * N and M >= 2
    K = weights.shape[0]
    BC = B * C
    wing_rows = (M - 1) * N
    biases = biases.reshape(K, 1, 2 * C)

    # Free contiguous reshape: fold batch into lanes -> lane-dense slabs.
    data_2d = data.reshape(MN, BC)                 # (M*N, B*C), no transpose
    adj_wing = adj[:, :wing_rows]                  # (N, (M-1)*N), VMEM-resident
    adj_self = adj[:, wing_rows:]                  # (N, N),       VMEM-resident
    wl_blk, wr_blk, bl_blk, br_blk = _expand_glu_params(weights, biases, B)

    kernel = functools.partial(
        _stack_gcn_kernel, wing_rows=wing_rows, num_of_kernel=K)

    out_2d = pl.pallas_call(
        kernel,
        out_shape=jax.ShapeDtypeStruct((N, BC), jnp.float32),
        grid=(1,),
        in_specs=[
            pl.BlockSpec((MN, BC), lambda i: (0, 0)),            # activations
            pl.BlockSpec((N, wing_rows), lambda i: (0, 0)),       # adj wing
            pl.BlockSpec((N, N), lambda i: (0, 0)),               # adj self
            pl.BlockSpec((K, BC, BC), lambda i: (0, 0, 0)),       # glu W lhs
            pl.BlockSpec((K, BC, BC), lambda i: (0, 0, 0)),       # glu W rhs
            pl.BlockSpec((K, 1, BC), lambda i: (0, 0, 0)),        # glu b lhs
            pl.BlockSpec((K, 1, BC), lambda i: (0, 0, 0)),        # glu b rhs
        ],
        out_specs=pl.BlockSpec((N, BC), lambda i: (0, 0)),         # lane-dense
        compiler_params=pltpu.CompilerParams(
            dimension_semantics=("arbitrary",)),
    )(data_2d, adj_wing, adj_self, wl_blk, wr_blk, bl_blk, br_blk)

    return out_2d.reshape(N, B, C)                 # free contiguous reshape


def _reference_forward(data, adj, weights, biases, num_of_vertices, merge_step):
    """Plain-JAX mirror of the PyTorch stack_gcn forward (eval mode)."""
    N, M = num_of_vertices, merge_step
    C = weights.shape[1]
    wing = data[:(M - 1) * N]
    x = data[-N:]
    res = x
    outs = []
    for k in range(weights.shape[0]):
        full = jnp.concatenate([wing, x], axis=0)
        mixed = jnp.einsum('nm,mbc->nbc', adj, full)
        z = jnp.einsum('nbc,cd->nbd', mixed, weights[k]) + biases[k]
        x = z[..., :C] * jax.nn.sigmoid(z[..., C:])
        outs.append(x)
    return jnp.max(jnp.stack(outs, axis=0), axis=0) + res


if __name__ == "__main__":
    num_of_vertices = 16
    merge_step = 4        # docstring: wing is 3N, adj is (N, 4N)
    batch = 8
    num_of_features = 32
    num_of_kernel = 3
    N, M, B, C, K = num_of_vertices, merge_step, batch, num_of_features, num_of_kernel

    key = jax.random.PRNGKey(0)
    k_data, k_adj, k_w, k_b = jax.random.split(key, 4)

    data = jax.random.normal(k_data, (M * N, B, C), dtype=jnp.float32)
    # Row-stochastic adjacency, as produced upstream (row softmax).
    adj = jax.nn.softmax(
        jax.random.normal(k_adj, (N, M * N), dtype=jnp.float32), axis=1)

    # glu params: xavier_normal_(gain=3e-4) weights, normal_(0,1) biases.
    std = 3e-4 * (2.0 / (C + 2 * C)) ** 0.5
    weights = std * jax.random.normal(k_w, (K, C, 2 * C), dtype=jnp.float32)
    biases = jax.random.normal(k_b, (K, 1, 2 * C), dtype=jnp.float32)

    fwd = jax.jit(stack_gcn_forward, static_argnums=(4, 5))
    out = jax.block_until_ready(fwd(data, adj, weights, biases, N, M))

    ref = _reference_forward(data, adj, weights, biases, N, M)
    assert out.shape == (N, B, C)
    max_err = float(jnp.max(jnp.abs(out - ref)))
    assert jnp.allclose(out, ref, atol=1e-4, rtol=1e-4), max_err
    print("KERNEL_OK")
</pallas_src>

<mosaic_0001>
module attributes {stable_mosaic.version = 11 : i64} {
  func.func @_stack_gcn_kernel(%arg0: i32, %arg1: memref<64x256xf32, #tpu.memory_space<vmem>>, %arg2: memref<16x48xf32, #tpu.memory_space<vmem>>, %arg3: memref<16x16xf32, #tpu.memory_space<vmem>>, %arg4: memref<3x256x256xf32, #tpu.memory_space<vmem>>, %arg5: memref<3x256x256xf32, #tpu.memory_space<vmem>>, %arg6: memref<3x1x256xf32, #tpu.memory_space<vmem>>, %arg7: memref<3x1x256xf32, #tpu.memory_space<vmem>>, %arg8: memref<16x256xf32, #tpu.memory_space<vmem>>) attributes {dimension_semantics = [#tpu.dimension_semantics<arbitrary>], iteration_bounds = array<i64: 1>, scalar_prefetch = 0 : i64, scratch_operands = 0 : i64, tpu.core_type = #tpu.core_type<tc>, window_params = [{pipeline_mode = #tpu.pipeline_mode<synchronous>, transform_indices = @transform_0, window_bounds = array<i64: 64, 256>}, {pipeline_mode = #tpu.pipeline_mode<synchronous>, transform_indices = @transform_1, window_bounds = array<i64: 16, 48>}, {pipeline_mode = #tpu.pipeline_mode<synchronous>, transform_indices = @transform_2, window_bounds = array<i64: 16, 16>}, {pipeline_mode = #tpu.pipeline_mode<synchronous>, transform_indices = @transform_3, window_bounds = array<i64: 3, 256, 256>}, {pipeline_mode = #tpu.pipeline_mode<synchronous>, transform_indices = @transform_4, window_bounds = array<i64: 3, 256, 256>}, {pipeline_mode = #tpu.pipeline_mode<synchronous>, transform_indices = @transform_5, window_bounds = array<i64: 3, 1, 256>}, {pipeline_mode = #tpu.pipeline_mode<synchronous>, transform_indices = @transform_6, window_bounds = array<i64: 3, 1, 256>}, {pipeline_mode = #tpu.pipeline_mode<synchronous>, transform_indices = @transform_7, window_bounds = array<i64: 16, 256>}]} {
    %c0 = arith.constant 0 : index
    %c0_0 = arith.constant 0 : index
    %0 = vector.load %arg1[%c0, %c0_0] : memref<64x256xf32, #tpu.memory_space<vmem>>, vector<48x256xf32>
    %c48 = arith.constant 48 : index
    %c0_1 = arith.constant 0 : index
    %1 = vector.load %arg1[%c48, %c0_1] : memref<64x256xf32, #tpu.memory_space<vmem>>, vector<16x256xf32>
    %c0_2 = arith.constant 0 : index
    %c0_3 = arith.constant 0 : index
    %2 = vector.load %arg2[%c0_2, %c0_3] : memref<16x48xf32, #tpu.memory_space<vmem>>, vector<16x48xf32>
    %cst = arith.constant dense<0.000000e+00> : vector<16x256xf32>
    %3 = tpu.matmul %2, %0, %cst {dimension_numbers = #tpu.dot_dimension_numbers<[1], [0], [0], [1], [0, 0, 1, 1], [], []>} : vector<16x48xf32>, vector<48x256xf32>, vector<16x256xf32> -> vector<16x256xf32>
    %c0_4 = arith.constant 0 : index
    %c0_5 = arith.constant 0 : index
    %4 = vector.load %arg3[%c0_4, %c0_5] : memref<16x16xf32, #tpu.memory_space<vmem>>, vector<16x16xf32>
    %cst_6 = arith.constant dense<0.000000e+00> : vector<16x256xf32>
    %5 = tpu.matmul %4, %1, %cst_6 {dimension_numbers = #tpu.dot_dimension_numbers<[1], [0], [0], [1], [0, 0, 1, 1], [], []>} : vector<16x16xf32>, vector<16x256xf32>, vector<16x256xf32> -> vector<16x256xf32>
    %6 = arith.addf %3, %5 : vector<16x256xf32>
    %c0_7 = arith.constant 0 : index
    %c0_8 = arith.constant 0 : index
    %c0_9 = arith.constant 0 : index
    %7 = vector.load %arg4[%c0_7, %c0_8, %c0_9] : memref<3x256x256xf32, #tpu.memory_space<vmem>>, vector<1x256x256xf32>
    %8 = vector.shape_cast %7 : vector<1x256x256xf32> to vector<256x256xf32>
    %cst_10 = arith.constant dense<0.000000e+00> : vector<16x256xf32>
    %9 = tpu.matmul %6, %8, %cst_10 {dimension_numbers = #tpu.dot_dimension_numbers<[1], [0], [0], [1], [0, 0, 1, 1], [], []>} : vector<16x256xf32>, vector<256x256xf32>, vector<16x256xf32> -> vector<16x256xf32>
    %c0_11 = arith.constant 0 : index
    %c0_12 = arith.constant 0 : index
    %c0_13 = arith.constant 0 : index
    %10 = vector.load %arg6[%c0_11, %c0_12, %c0_13] : memref<3x1x256xf32, #tpu.memory_space<vmem>>, vector<1x1x256xf32>
    %11 = vector.shape_cast %10 : vector<1x1x256xf32> to vector<1x256xf32>
    %12 = vector.broadcast %11 : vector<1x256xf32> to vector<16x256xf32>
    %13 = arith.addf %9, %12 : vector<16x256xf32>
    %c0_14 = arith.constant 0 : index
    %c0_15 = arith.constant 0 : index
    %c0_16 = arith.constant 0 : index
    %14 = vector.load %arg5[%c0_14, %c0_15, %c0_16] : memref<3x256x256xf32, #tpu.memory_space<vmem>>, vector<1x256x256xf32>
    %15 = vector.shape_cast %14 : vector<1x256x256xf32> to vector<256x256xf32>
    %cst_17 = arith.constant dense<0.000000e+00> : vector<16x256xf32>
    %16 = tpu.matmul %6, %15, %cst_17 {dimension_numbers = #tpu.dot_dimension_numbers<[1], [0], [0], [1], [0, 0, 1, 1], [], []>} : vector<16x256xf32>, vector<256x256xf32>, vector<16x256xf32> -> vector<16x256xf32>
    %c0_18 = arith.constant 0 : index
    %c0_19 = arith.constant 0 : index
    %c0_20 = arith.constant 0 : index
    %17 = vector.load %arg7[%c0_18, %c0_19, %c0_20] : memref<3x1x256xf32, #tpu.memory_space<vmem>>, vector<1x1x256xf32>
    %18 = vector.shape_cast %17 : vector<1x1x256xf32> to vector<1x256xf32>
    %19 = vector.broadcast %18 : vector<1x256xf32> to vector<16x256xf32>
    %20 = arith.addf %16, %19 : vector<16x256xf32>
    %21 = arith.negf %20 : vector<16x256xf32>
    %22 = math.exp %21 : vector<16x256xf32>
    %cst_21 = arith.constant 1.000000e+00 : f32
    %23 = vector.broadcast %cst_21 : f32 to vector<16x256xf32>
    %24 = arith.addf %23, %22 : vector<16x256xf32>
    %25 = arith.divf %23, %24 : vector<16x256xf32>
    %26 = arith.mulf %13, %25 : vector<16x256xf32>
    %c0_22 = arith.constant 0 : index
    %c0_23 = arith.constant 0 : index
    %27 = vector.load %arg3[%c0_22, %c0_23] : memref<16x16xf32, #tpu.memory_space<vmem>>, vector<16x16xf32>
    %cst_24 = arith.constant dense<0.000000e+00> : vector<16x256xf32>
    %28 = tpu.matmul %27, %26, %cst_24 {dimension_numbers = #tpu.dot_dimension_numbers<[1], [0], [0], [1], [0, 0, 1, 1], [], []>} : vector<16x16xf32>, vector<16x256xf32>, vector<16x256xf32> -> vector<16x256xf32>
    %29 = arith.addf %3, %28 : vector<16x256xf32>
    %c1 = arith.constant 1 : index
    %c0_25 = arith.constant 0 : index
    %c0_26 = arith.constant 0 : index
    %30 = vector.load %arg4[%c1, %c0_25, %c0_26] : memref<3x256x256xf32, #tpu.memory_space<vmem>>, vector<1x256x256xf32>
    %31 = vector.shape_cast %30 : vector<1x256x256xf32> to vector<256x256xf32>
    %cst_27 = arith.constant dense<0.000000e+00> : vector<16x256xf32>
    %32 = tpu.matmul %29, %31, %cst_27 {dimension_numbers = #tpu.dot_dimension_numbers<[1], [0], [0], [1], [0, 0, 1, 1], [], []>} : vector<16x256xf32>, vector<256x256xf32>, vector<16x256xf32> -> vector<16x256xf32>
    %c1_28 = arith.constant 1 : index
    %c0_29 = arith.constant 0 : index
    %c0_30 = arith.constant 0 : index
    %33 = vector.load %arg6[%c1_28, %c0_29, %c0_30] : memref<3x1x256xf32, #tpu.memory_space<vmem>>, vector<1x1x256xf32>
    %34 = vector.shape_cast %33 : vector<1x1x256xf32> to vector<1x256xf32>
    %35 = vector.broadcast %34 : vector<1x256xf32> to vector<16x256xf32>
    %36 = arith.addf %32, %35 : vector<16x256xf32>
    %c1_31 = arith.constant 1 : index
    %c0_32 = arith.constant 0 : index
    %c0_33 = arith.constant 0 : index
    %37 = vector.load %arg5[%c1_31, %c0_32, %c0_33] : memref<3x256x256xf32, #tpu.memory_space<vmem>>, vector<1x256x256xf32>
    %38 = vector.shape_cast %37 : vector<1x256x256xf32> to vector<256x256xf32>
    %cst_34 = arith.constant dense<0.000000e+00> : vector<16x256xf32>
    %39 = tpu.matmul %29, %38, %cst_34 {dimension_numbers = #tpu.dot_dimension_numbers<[1], [0], [0], [1], [0, 0, 1, 1], [], []>} : vector<16x256xf32>, vector<256x256xf32>, vector<16x256xf32> -> vector<16x256xf32>
    %c1_35 = arith.constant 1 : index
    %c0_36 = arith.constant 0 : index
    %c0_37 = arith.constant 0 : index
    %40 = vector.load %arg7[%c1_35, %c0_36, %c0_37] : memref<3x1x256xf32, #tpu.memory_space<vmem>>, vector<1x1x256xf32>
    %41 = vector.shape_cast %40 : vector<1x1x256xf32> to vector<1x256xf32>
    %42 = vector.broadcast %41 : vector<1x256xf32> to vector<16x256xf32>
    %43 = arith.addf %39, %42 : vector<16x256xf32>
    %44 = arith.negf %43 : vector<16x256xf32>
    %45 = math.exp %44 : vector<16x256xf32>
    %cst_38 = arith.constant 1.000000e+00 : f32
    %46 = vector.broadcast %cst_38 : f32 to vector<16x256xf32>
    %47 = arith.addf %46, %45 : vector<16x256xf32>
    %48 = arith.divf %46, %47 : vector<16x256xf32>
    %49 = arith.mulf %36, %48 : vector<16x256xf32>
    %50 = arith.maximumf %26, %49 : vector<16x256xf32>
    %c0_39 = arith.constant 0 : index
    %c0_40 = arith.constant 0 : index
    %51 = vector.load %arg3[%c0_39, %c0_40] : memref<16x16xf32, #tpu.memory_space<vmem>>, vector<16x16xf32>
    %cst_41 = arith.constant dense<0.000000e+00> : vector<16x256xf32>
    %52 = tpu.matmul %51, %49, %cst_41 {dimension_numbers = #tpu.dot_dimension_numbers<[1], [0], [0], [1], [0, 0, 1, 1], [], []>} : vector<16x16xf32>, vector<16x256xf32>, vector<16x256xf32> -> vector<16x256xf32>
    %53 = arith.addf %3, %52 : vector<16x256xf32>
    %c2 = arith.constant 2 : index
    %c0_42 = arith.constant 0 : index
    %c0_43 = arith.constant 0 : index
    %54 = vector.load %arg4[%c2, %c0_42, %c0_43] : memref<3x256x256xf32, #tpu.memory_space<vmem>>, vector<1x256x256xf32>
    %55 = vector.shape_cast %54 : vector<1x256x256xf32> to vector<256x256xf32>
    %cst_44 = arith.constant dense<0.000000e+00> : vector<16x256xf32>
    %56 = tpu.matmul %53, %55, %cst_44 {dimension_numbers = #tpu.dot_dimension_numbers<[1], [0], [0], [1], [0, 0, 1, 1], [], []>} : vector<16x256xf32>, vector<256x256xf32>, vector<16x256xf32> -> vector<16x256xf32>
    %c2_45 = arith.constant 2 : index
    %c0_46 = arith.constant 0 : index
    %c0_47 = arith.constant 0 : index
    %57 = vector.load %arg6[%c2_45, %c0_46, %c0_47] : memref<3x1x256xf32, #tpu.memory_space<vmem>>, vector<1x1x256xf32>
    %58 = vector.shape_cast %57 : vector<1x1x256xf32> to vector<1x256xf32>
    %59 = vector.broadcast %58 : vector<1x256xf32> to vector<16x256xf32>
    %60 = arith.addf %56, %59 : vector<16x256xf32>
    %c2_48 = arith.constant 2 : index
    %c0_49 = arith.constant 0 : index
    %c0_50 = arith.constant 0 : index
    %61 = vector.load %arg5[%c2_48, %c0_49, %c0_50] : memref<3x256x256xf32, #tpu.memory_space<vmem>>, vector<1x256x256xf32>
    %62 = vector.shape_cast %61 : vector<1x256x256xf32> to vector<256x256xf32>
    %cst_51 = arith.constant dense<0.000000e+00> : vector<16x256xf32>
    %63 = tpu.matmul %53, %62, %cst_51 {dimension_numbers = #tpu.dot_dimension_numbers<[1], [0], [0], [1], [0, 0, 1, 1], [], []>} : vector<16x256xf32>, vector<256x256xf32>, vector<16x256xf32> -> vector<16x256xf32>
    %c2_52 = arith.constant 2 : index
    %c0_53 = arith.constant 0 : index
    %c0_54 = arith.constant 0 : index
    %64 = vector.load %arg7[%c2_52, %c0_53, %c0_54] : memref<3x1x256xf32, #tpu.memory_space<vmem>>, vector<1x1x256xf32>
    %65 = vector.shape_cast %64 : vector<1x1x256xf32> to vector<1x256xf32>
    %66 = vector.broadcast %65 : vector<1x256xf32> to vector<16x256xf32>
    %67 = arith.addf %63, %66 : vector<16x256xf32>
    %68 = arith.negf %67 : vector<16x256xf32>
    %69 = math.exp %68 : vector<16x256xf32>
    %cst_55 = arith.constant 1.000000e+00 : f32
    %70 = vector.broadcast %cst_55 : f32 to vector<16x256xf32>
    %71 = arith.addf %70, %69 : vector<16x256xf32>
    %72 = arith.divf %70, %71 : vector<16x256xf32>
    %73 = arith.mulf %60, %72 : vector<16x256xf32>
    %74 = arith.maximumf %50, %73 : vector<16x256xf32>
    %75 = arith.addf %74, %1 : vector<16x256xf32>
    %c0_56 = arith.constant 0 : index
    %c0_57 = arith.constant 0 : index
    %76 = vector.load %arg8[%c0_56, %c0_57] : memref<16x256xf32, #tpu.memory_space<vmem>>, vector<16x256xf32>
    tpu.vector_store %arg8[%c0_56, %c0_57], %75 {strides = array<i32>} : memref<16x256xf32, #tpu.memory_space<vmem>>, vector<16x256xf32>,
    return
  }
  func.func @transform_0(%arg0: i32) -> (i32, i32) {
    %c0_i32 = arith.constant 0 : i32
    %c0_i32_0 = arith.constant 0 : i32
    %c0_i32_1 = arith.constant 0 : i32
    return %c0_i32, %c0_i32_0 : i32, i32
  }
  func.func @transform_1(%arg0: i32) -> (i32, i32) {
    %c0_i32 = arith.constant 0 : i32
    %c0_i32_0 = arith.constant 0 : i32
    %c0_i32_1 = arith.constant 0 : i32
    return %c0_i32, %c0_i32_0 : i32, i32
  }
  func.func @transform_2(%arg0: i32) -> (i32, i32) {
    %c0_i32 = arith.constant 0 : i32
    %c0_i32_0 = arith.constant 0 : i32
    %c0_i32_1 = arith.constant 0 : i32
    return %c0_i32, %c0_i32_0 : i32, i32
  }
  func.func @transform_3(%arg0: i32) -> (i32, i32, i32) {
    %c0_i32 = arith.constant 0 : i32
    %c0_i32_0 = arith.constant 0 : i32
    %c0_i32_1 = arith.constant 0 : i32
    %c0_i32_2 = arith.constant 0 : i32
    return %c0_i32, %c0_i32_0, %c0_i32_1 : i32, i32, i32
  }
  func.func @transform_4(%arg0: i32) -> (i32, i32, i32) {
    %c0_i32 = arith.constant 0 : i32
    %c0_i32_0 = arith.constant 0 : i32
    %c0_i32_1 = arith.constant 0 : i32
    %c0_i32_2 = arith.constant 0 : i32
    return %c0_i32, %c0_i32_0, %c0_i32_1 : i32, i32, i32
  }
  func.func @transform_5(%arg0: i32) -> (i32, i32, i32) {
    %c0_i32 = arith.constant 0 : i32
    %c0_i32_0 = arith.constant 0 : i32
    %c0_i32_1 = arith.constant 0 : i32
    %c0_i32_2 = arith.constant 0 : i32
    return %c0_i32, %c0_i32_0, %c0_i32_1 : i32, i32, i32
  }
  func.func @transform_6(%arg0: i32) -> (i32, i32, i32) {
    %c0_i32 = arith.constant 0 : i32
    %c0_i32_0 = arith.constant 0 : i32
    %c0_i32_1 = arith.constant 0 : i32
    %c0_i32_2 = arith.constant 0 : i32
    return %c0_i32, %c0_i32_0, %c0_i32_1 : i32, i32, i32
  }
  func.func @transform_7(%arg0: i32) -> (i32, i32) {
    %c0_i32 = arith.constant 0 : i32
    %c0_i32_0 = arith.constant 0 : i32
    %c0_i32_1 = arith.constant 0 : i32
    return %c0_i32, %c0_i32_0 : i32, i32
  }
}

</mosaic_0001>

<bundles_post_ra>
// kernel: stack_gcn_forward.1
= control target key start
LH: loop header
LB: loop body
LE: loop exit
PB: predicated region body
PF: predicated region fallthrough
CT: control target
= control target key end

     0   :  { %v1745_v3 = vmov 0.0   ;;  %vm130_vm0 = vcmask 130048   ;;  %vm44_vm1 = vcmask 392192   ;;  %s3138_s0 = inlined_call_operand.vmem [shape: f32[64,256], index: 0, kind: input, shape index: {}]   ;;  %s3139_s2 = inlined_call_operand.vmem [shape: f32[16,16], index: 2, kind: input, shape index: {}]   ;;  %s3140_s3 = inlined_call_operand.vmem [shape: f32[3,256,256], index: 3, kind: input, shape index: {}]   ;;  %s3141_s1 = inlined_call_operand.vmem [shape: f32[16,48], index: 1, kind: input, shape index: {}]   ;;  %s3142_s4 = inlined_call_operand.vmem [shape: f32[3,256,256], index: 4, kind: input, shape index: {}]   ;;  %s3143_s6 = inlined_call_operand.vmem [shape: f32[3,1,256], index: 6, kind: input, shape index: {}]   ;;  %s3144_s5 = inlined_call_operand.vmem [shape: f32[3,1,256], index: 5, kind: input, shape index: {}]   ;;  %s3145_s7 = inlined_call_operand.vmem [shape: f32[16,256], index: 7, kind: output, shape index: {}]  }
   0x1   :  { %v37_v0 = vld [vmem:[%s3138_s0 + $0x58] sm:$0xff]  ;;  %v36_v1 = vld [vmem:[%s3138_s0 + $0x50] sm:$0xff]  ;;  %v35_v2 = vld [vmem:[%s3138_s0 + $0x48] sm:$0xff]  ;;  %201 = vmatprep.mubr.f32.mxu1 %v1745_v3  ;;  %115 = vmatprep.mubr.f32.mxu0 %v1745_v3 }
   0x2   :  { %71 = vmatprep.subr.mxu0 %v37_v0  ;;  %v34_v4 = vld [vmem:[%s3138_s0 + $0x40] sm:$0xff]  ;;  %v33_v5 = vld [vmem:[%s3138_s0 + $0x38] sm:$0xff]  ;;  %v32_v7 = vld [vmem:[%s3138_s0 + $0x30] sm:$0xff] }
   0x3   :  { %72 = vmatpush1.msra.mxu0 %v36_v1  ;;  %v41_v6 = vld [vmem:[%s3138_s0 + $0x78] sm:$0xff]  ;;  %v40_v8 = vld [vmem:[%s3138_s0 + $0x70] sm:$0xff]  ;;  %v39_v9 = vld [vmem:[%s3138_s0 + $0x68] sm:$0xff] }
   0x4   :  { %73 = vmatprep.subr.mxu0 %v35_v2  ;;  %165 = vmatprep.subr.mxu1 %v41_v6  ;;  %v31_v10 = vld [vmem:[%s3138_s0 + $0x28] sm:$0xff]  ;;  %v38_v11 = vld [vmem:[%s3138_s0 + $0x60] sm:$0xff]  ;;  %v29_v14 = vld [vmem:[%s3138_s0 + $0x18] sm:$0xff] }
   0x5   :  { %74 = vmatpush1.msra.mxu0 %v34_v4  ;;  %166 = vmatpush1.msra.mxu1 %v40_v8  ;;  %v30_v12 = vld [vmem:[%s3138_s0 + $0x20] sm:$0xff]  ;;  %v249_v15 = vld [vmem:[%s3140_s3 + $0xf8] sm:$0xff]  ;;  %v28_v16 = vld [vmem:[%s3138_s0 + $0x10] sm:$0xff] }
   0x6   :  { %75 = vmatprep.subr.mxu0 %v33_v5  ;;  %167 = vmatprep.subr.mxu1 %v39_v9  ;;  %v1827_v13 = vld [vmem:[%s3139_s2] sm:$0xff]  ;;  %v248_v17 = vld [vmem:[%s3140_s3 + $0xf0] sm:$0xff]  ;;  %v27_v18 = vld [vmem:[%s3138_s0 + $0x8] sm:$0xff] }
   0x7   :  { %76 = vmatpush1.msra.mxu0 %v32_v7  ;;  %168 = vmatpush1.msra.mxu1 %v38_v11  ;;  %v1850_v19 = vld [vmem:[%s3139_s2 + $0x8] sm:$0xff]  ;;  %v26_v20 = vld [vmem:[%s3138_s0] sm:$0xff]  ;;  %v402_v23 = vld [vmem:[%s3142_s4 + $0xf8] sm:$0xff] }
   0x8   :  { %77 = vmatprep.subr.mxu0 %v31_v10  ;;  %1412 = vmatmul.mubr.msk.f32.vlgmr.msra.gmra.mxu1 %vm130_vm0, %v1827_v13  ;;  %v247_v21 = vld [vmem:[%s3140_s3 + $0xe8] sm:$0xff]  ;;  %v42_v22 = vld [vmem:[%s3141_s1] sm:$0xff]  ;;  %v401_v24 = vld [vmem:[%s3142_s4 + $0xf0] sm:$0xff] }
   0x9   :  { %78 = vmatpush1.msra.mxu0 %v30_v12  ;;  %207 = vmatprep.mubr.f32.mxu1 %v1745_v3  ;;  %v400_v25 = vld [vmem:[%s3142_s4 + $0xe8] sm:$0xff]  ;;  %v246_v26 = vld [vmem:[%s3140_s3 + $0xe0] sm:$0xff]  ;;  %v245_v28 = vld [vmem:[%s3140_s3 + $0xd8] sm:$0xff] }
   0xa   :  { %79 = vmatprep.subr.mxu0 %v29_v14  ;;  %294 = vmatprep.subr.mxu1 %v249_v15  ;;  %v399_v27 = vld [vmem:[%s3142_s4 + $0xe0] sm:$0xff]  ;;  %v43_v29 = vld [vmem:[%s3141_s1 + $0x8] sm:$0xff]  ;;  %v398_v30 = vld [vmem:[%s3142_s4 + $0xd8] sm:$0xff] }
   0xb   :  { %80 = vmatpush1.msra.mxu0 %v28_v16  ;;  %295 = vmatpush1.msra.mxu1 %v248_v17  ;;  %v244_v31 = vld [vmem:[%s3140_s3 + $0xd0] sm:$0xff]  ;;  %v243_v33 = vld [vmem:[%s3140_s3 + $0xc8] sm:$0xff]  ;;  %v242_v35 = vld [vmem:[%s3140_s3 + $0xc0] sm:$0xff] }
   0xc   :  { %81 = vmatprep.subr.mxu0 %v27_v18  ;;  %1413 = vmatmul.mubr.msk.f32.gmra.mxu1 %vm130_vm0, %v1850_v19  ;;  %v397_v32 = vld [vmem:[%s3142_s4 + $0xd0] sm:$0xff]  ;;  %v396_v34 = vld [vmem:[%s3142_s4 + $0xc8] sm:$0xff]  ;;  %v395_v36 = vld [vmem:[%s3142_s4 + $0xc0] sm:$0xff] }
   0xd   :  { %82 = vmatpush1.msra.mxu0 %v26_v20  ;;  %296 = vmatprep.subr.mxu1 %v247_v21  ;;  %v241_v37 = vld [vmem:[%s3140_s3 + $0xb8] sm:$0xff]  ;;  %v240_v39 = vld [vmem:[%s3140_s3 + $0xb0] sm:$0xff]  ;;  %v239_v41 = vld [vmem:[%s3140_s3 + $0xa8] sm:$0xff] }
   0xe   :  { %1410 = vmatmul.mubr.msk.f32.vlgmr.msra.gmra.mxu0 %vm44_vm1, %v42_v22  ;;  %447 = vmatprep.subr.mxu0 %v402_v23  ;;  %v394_v38 = vld [vmem:[%s3142_s4 + $0xb8] sm:$0xff]  ;;  %v393_v40 = vld [vmem:[%s3142_s4 + $0xb0] sm:$0xff]  ;;  %v392_v42 = vld [vmem:[%s3142_s4 + $0xa8] sm:$0xff] }
   0xf   :  { %121 = vmatprep.mubr.f32.mxu0 %v1745_v3  ;;  %448 = vmatpush1.msra.mxu0 %v401_v24  ;;  %v238_v43 = vld [vmem:[%s3140_s3 + $0xa0] sm:$0xff]  ;;  %v237_v45 = vld [vmem:[%s3140_s3 + $0x98] sm:$0xff]  ;;  %v236_v47 = vld [vmem:[%s3140_s3 + $0x90] sm:$0xff] }
  0x10   :  { %449 = vmatprep.subr.mxu0 %v400_v25  ;;  %297 = vmatpush1.msra.mxu1 %v246_v26  ;;  %v391_v44 = vld [vmem:[%s3142_s4 + $0xa0] sm:$0xff]  ;;  %v390_v46 = vld [vmem:[%s3142_s4 + $0x98] sm:$0xff]  ;;  %v389_v48 = vld [vmem:[%s3142_s4 + $0x90] sm:$0xff] }
  0x11   :  { %450 = vmatpush1.msra.mxu0 %v399_v27  ;;  %298 = vmatprep.subr.mxu1 %v245_v28  ;;  %v235_v49 = vld [vmem:[%s3140_s3 + $0x88] sm:$0xff]  ;;  %v234_v51 = vld [vmem:[%s3140_s3 + $0x80] sm:$0xff]  ;;  %v233_v53 = vld [vmem:[%s3140_s3 + $0x78] sm:$0xff] }
  0x12   :  { %1411 = vmatmul.mubr.msk.f32.gmra.mxu0 %vm44_vm1, %v43_v29  ;;  %451 = vmatprep.subr.mxu0 %v398_v30  ;;  %v388_v50 = vld [vmem:[%s3142_s4 + $0x88] sm:$0xff]  ;;  %v387_v52 = vld [vmem:[%s3142_s4 + $0x80] sm:$0xff]  ;;  %v386_v54 = vld [vmem:[%s3142_s4 + $0x78] sm:$0xff] }
  0x13   :  { %299 = vmatpush1.msra.mxu1 %v244_v31  ;;  %452 = vmatpush1.msra.mxu0 %v397_v32  ;;  %v232_v55 = vld [vmem:[%s3140_s3 + $0x70] sm:$0xff]  ;;  %v231_v57 = vld [vmem:[%s3140_s3 + $0x68] sm:$0xff]  ;;  %v230_v59 = vld [vmem:[%s3140_s3 + $0x60] sm:$0xff] }
  0x14   :  { %300 = vmatprep.subr.mxu1 %v243_v33  ;;  %453 = vmatprep.subr.mxu0 %v396_v34  ;;  %v385_v56 = vld [vmem:[%s3142_s4 + $0x70] sm:$0xff]  ;;  %v384_v58 = vld [vmem:[%s3142_s4 + $0x68] sm:$0xff]  ;;  %v383_v60 = vld [vmem:[%s3142_s4 + $0x60] sm:$0xff] }
  0x15   :  { %301 = vmatpush1.msra.mxu1 %v242_v35  ;;  %454 = vmatpush1.msra.mxu0 %v395_v36  ;;  %v229_v61 = vld [vmem:[%s3140_s3 + $0x58] sm:$0xff]  ;;  %v228_v63 = vld [vmem:[%s3140_s3 + $0x50] sm:$0xff]  ;;  %v227_v1 = vld [vmem:[%s3140_s3 + $0x48] sm:$0xff] }
  0x16   :  { %302 = vmatprep.subr.mxu1 %v241_v37  ;;  %455 = vmatprep.subr.mxu0 %v394_v38  ;;  %v382_v62 = vld [vmem:[%s3142_s4 + $0x58] sm:$0xff]  ;;  %v381_v0 = vld [vmem:[%s3142_s4 + $0x50] sm:$0xff]  ;;  %v380_v2 = vld [vmem:[%s3142_s4 + $0x48] sm:$0xff] }
  0x17   :  { %303 = vmatpush1.msra.mxu1 %v240_v39  ;;  %456 = vmatpush1.msra.mxu0 %v393_v40  ;;  %v226_v4 = vld [vmem:[%s3140_s3 + $0x40] sm:$0xff]  ;;  %v225_v6 = vld [vmem:[%s3140_s3 + $0x38] sm:$0xff]  ;;  %v224_v8 = vld [vmem:[%s3140_s3 + $0x30] sm:$0xff] }
  0x18   :  { %304 = vmatprep.subr.mxu1 %v239_v41  ;;  %457 = vmatprep.subr.mxu0 %v392_v42  ;;  %v379_v5 = vld [vmem:[%s3142_s4 + $0x40] sm:$0xff]  ;;  %v378_v7 = vld [vmem:[%s3142_s4 + $0x38] sm:$0xff]  ;;  %v377_v9 = vld [vmem:[%s3142_s4 + $0x30] sm:$0xff] }
  0x19   :  { %305 = vmatpush1.msra.mxu1 %v238_v43  ;;  %458 = vmatpush1.msra.mxu0 %v391_v44  ;;  %v223_v10 = vld [vmem:[%s3140_s3 + $0x28] sm:$0xff]  ;;  %v222_v12 = vld [vmem:[%s3140_s3 + $0x20] sm:$0xff]  ;;  %v221_v15 = vld [vmem:[%s3140_s3 + $0x18] sm:$0xff] }
  0x1a   :  { %306 = vmatprep.subr.mxu1 %v237_v45  ;;  %459 = vmatprep.subr.mxu0 %v390_v46  ;;  %v376_v11 = vld [vmem:[%s3142_s4 + $0x28] sm:$0xff]  ;;  %v375_v14 = vld [vmem:[%s3142_s4 + $0x20] sm:$0xff]  ;;  %v374_v16 = vld [vmem:[%s3142_s4 + $0x18] sm:$0xff] }
  0x1b   :  { %307 = vmatpush1.msra.mxu1 %v236_v47  ;;  %460 = vmatpush1.msra.mxu0 %v389_v48  ;;  %v220_v17 = vld [vmem:[%s3140_s3 + $0x10] sm:$0xff]  ;;  %v219_v20 = vld [vmem:[%s3140_s3 + $0x8] sm:$0xff]  ;;  %v218_v22 = vld [vmem:[%s3140_s3] sm:$0xff] }
  0x1c   :  { %308 = vmatprep.subr.mxu1 %v235_v49  ;;  %461 = vmatprep.subr.mxu0 %v388_v50  ;;  %v373_v18 = vld [vmem:[%s3142_s4 + $0x10] sm:$0xff]  ;;  %v372_v21 = vld [vmem:[%s3142_s4 + $0x8] sm:$0xff]  ;;  %v371_v23 = vld [vmem:[%s3142_s4] sm:$0xff] }
  0x1d   :  { %309 = vmatpush1.msra.mxu1 %v234_v51  ;;  %462 = vmatpush1.msra.mxu0 %v387_v52  ;;  %v281_v24 = vld [vmem:[%s3140_s3 + $0x1f8] sm:$0xff]  ;;  %v280_v26 = vld [vmem:[%s3140_s3 + $0x1f0] sm:$0xff]  ;;  %v279_v28 = vld [vmem:[%s3140_s3 + $0x1e8] sm:$0xff] }
  0x1e   :  { %310 = vmatprep.subr.mxu1 %v233_v53  ;;  %463 = vmatprep.subr.mxu0 %v386_v54  ;;  %v434_v25 = vld [vmem:[%s3142_s4 + $0x1f8] sm:$0xff]  ;;  %v433_v27 = vld [vmem:[%s3142_s4 + $0x1f0] sm:$0xff]  ;;  %v432_v29 = vld [vmem:[%s3142_s4 + $0x1e8] sm:$0xff] }
  0x1f   :  { %311 = vmatpush1.msra.mxu1 %v232_v55  ;;  %464 = vmatpush1.msra.mxu0 %v385_v56  ;;  %v278_v30 = vld [vmem:[%s3140_s3 + $0x1e0] sm:$0xff]  ;;  %v277_v32 = vld [vmem:[%s3140_s3 + $0x1d8] sm:$0xff]  ;;  %v276_v34 = vld [vmem:[%s3140_s3 + $0x1d0] sm:$0xff] }
  0x20   :  { %312 = vmatprep.subr.mxu1 %v231_v57  ;;  %465 = vmatprep.subr.mxu0 %v384_v58  ;;  %v431_v31 = vld [vmem:[%s3142_s4 + $0x1e0] sm:$0xff]  ;;  %v430_v33 = vld [vmem:[%s3142_s4 + $0x1d8] sm:$0xff]  ;;  %v429_v35 = vld [vmem:[%s3142_s4 + $0x1d0] sm:$0xff] }
  0x21   :  { %313 = vmatpush1.msra.mxu1 %v230_v59  ;;  %466 = vmatpush1.msra.mxu0 %v383_v60  ;;  %v275_v36 = vld [vmem:[%s3140_s3 + $0x1c8] sm:$0xff]  ;;  %v274_v38 = vld [vmem:[%s3140_s3 + $0x1c0] sm:$0xff]  ;;  %v273_v40 = vld [vmem:[%s3140_s3 + $0x1b8] sm:$0xff] }
  0x22   :  { %314 = vmatprep.subr.mxu1 %v229_v61  ;;  %467 = vmatprep.subr.mxu0 %v382_v62  ;;  %v428_v37 = vld [vmem:[%s3142_s4 + $0x1c8] sm:$0xff]  ;;  %v427_v39 = vld [vmem:[%s3142_s4 + $0x1c0] sm:$0xff]  ;;  %v426_v41 = vld [vmem:[%s3142_s4 + $0x1b8] sm:$0xff] }
  0x23   :  { %315 = vmatpush1.msra.mxu1 %v228_v63  ;;  %468 = vmatpush1.msra.mxu0 %v381_v0  ;;  %v272_v42 = vld [vmem:[%s3140_s3 + $0x1b0] sm:$0xff]  ;;  %v271_v44 = vld [vmem:[%s3140_s3 + $0x1a8] sm:$0xff]  ;;  %v270_v46 = vld [vmem:[%s3140_s3 + $0x1a0] sm:$0xff] }
  0x24   :  { %316 = vmatprep.subr.mxu1 %v227_v1  ;;  %469 = vmatprep.subr.mxu0 %v380_v2  ;;  %v425_v43 = vld [vmem:[%s3142_s4 + $0x1b0] sm:$0xff]  ;;  %v424_v45 = vld [vmem:[%s3142_s4 + $0x1a8] sm:$0xff]  ;;  %v423_v47 = vld [vmem:[%s3142_s4 + $0x1a0] sm:$0xff] }
  0x25   :  { %317 = vmatpush1.msra.mxu1 %v226_v4  ;;  %470 = vmatpush1.msra.mxu0 %v379_v5  ;;  %v269_v48 = vld [vmem:[%s3140_s3 + $0x198] sm:$0xff]  ;;  %v268_v50 = vld [vmem:[%s3140_s3 + $0x190] sm:$0xff]  ;;  %v267_v52 = vld [vmem:[%s3140_s3 + $0x188] sm:$0xff] }
  0x26   :  { %318 = vmatprep.subr.mxu1 %v225_v6  ;;  %471 = vmatprep.subr.mxu0 %v378_v7  ;;  %v422_v49 = vld [vmem:[%s3142_s4 + $0x198] sm:$0xff]  ;;  %v421_v51 = vld [vmem:[%s3142_s4 + $0x190] sm:$0xff]  ;;  %v420_v53 = vld [vmem:[%s3142_s4 + $0x188] sm:$0xff] }
  0x27   :  { %319 = vmatpush1.msra.mxu1 %v224_v8  ;;  %472 = vmatpush1.msra.mxu0 %v377_v9  ;;  %v266_v54 = vld [vmem:[%s3140_s3 + $0x180] sm:$0xff]  ;;  %v265_v56 = vld [vmem:[%s3140_s3 + $0x178] sm:$0xff]  ;;  %v264_v58 = vld [vmem:[%s3140_s3 + $0x170] sm:$0xff] }
  0x28   :  { %320 = vmatprep.subr.mxu1 %v223_v10  ;;  %473 = vmatprep.subr.mxu0 %v376_v11  ;;  %v419_v55 = vld [vmem:[%s3142_s4 + $0x180] sm:$0xff]  ;;  %v418_v57 = vld [vmem:[%s3142_s4 + $0x178] sm:$0xff]  ;;  %v417_v59 = vld [vmem:[%s3142_s4 + $0x170] sm:$0xff] }
  0x29   :  { %321 = vmatpush1.msra.mxu1 %v222_v12  ;;  %474 = vmatpush1.msra.mxu0 %v375_v14  ;;  %v263_v60 = vld [vmem:[%s3140_s3 + $0x168] sm:$0xff]  ;;  %v262_v62 = vld [vmem:[%s3140_s3 + $0x160] sm:$0xff]  ;;  %v261_v0 = vld [vmem:[%s3140_s3 + $0x158] sm:$0xff] }
  0x2a   :  { %322 = vmatprep.subr.mxu1 %v221_v15  ;;  %475 = vmatprep.subr.mxu0 %v374_v16  ;;  %v416_v61 = vld [vmem:[%s3142_s4 + $0x168] sm:$0xff]  ;;  %v415_v63 = vld [vmem:[%s3142_s4 + $0x160] sm:$0xff]  ;;  %v414_v1 = vld [vmem:[%s3142_s4 + $0x158] sm:$0xff] }
  0x2b   :  { %323 = vmatpush1.msra.mxu1 %v220_v17  ;;  %476 = vmatpush1.msra.mxu0 %v373_v18  ;;  %v260_v2 = vld [vmem:[%s3140_s3 + $0x150] sm:$0xff]  ;;  %v259_v5 = vld [vmem:[%s3140_s3 + $0x148] sm:$0xff]  ;;  %v258_v7 = vld [vmem:[%s3140_s3 + $0x140] sm:$0xff] }
  0x2c   :  { %324 = vmatprep.subr.mxu1 %v219_v20  ;;  %477 = vmatprep.subr.mxu0 %v372_v21  ;;  %v413_v4 = vld [vmem:[%s3142_s4 + $0x150] sm:$0xff]  ;;  %v412_v6 = vld [vmem:[%s3142_s4 + $0x148] sm:$0xff]  ;;  %v411_v8 = vld [vmem:[%s3142_s4 + $0x140] sm:$0xff] }
  0x2d   :  { %325 = vmatpush1.msra.mxu1 %v218_v22  ;;  %478 = vmatpush1.msra.mxu0 %v371_v23  ;;  %v257_v9 = vld [vmem:[%s3140_s3 + $0x138] sm:$0xff]  ;;  %v256_v11 = vld [vmem:[%s3140_s3 + $0x130] sm:$0xff]  ;;  %v255_v14 = vld [vmem:[%s3140_s3 + $0x128] sm:$0xff] }
  0x2e   :  { %326 = vmatprep.subr.mxu1 %v281_v24  ;;  %479 = vmatprep.subr.mxu0 %v434_v25  ;;  %v410_v10 = vld [vmem:[%s3142_s4 + $0x138] sm:$0xff]  ;;  %v409_v12 = vld [vmem:[%s3142_s4 + $0x130] sm:$0xff]  ;;  %v408_v15 = vld [vmem:[%s3142_s4 + $0x128] sm:$0xff] }
  0x2f   :  { %327 = vmatpush2.msra.mxu1 %v280_v26  ;;  %480 = vmatpush2.msra.mxu0 %v433_v27  ;;  %v254_v16 = vld [vmem:[%s3140_s3 + $0x120] sm:$0xff]  ;;  %v253_v18 = vld [vmem:[%s3140_s3 + $0x118] sm:$0xff]  ;;  %v252_v21 = vld [vmem:[%s3140_s3 + $0x110] sm:$0xff] }
  0x30   :  { %328 = vmatprep.subr.mxu1 %v279_v28  ;;  %481 = vmatprep.subr.mxu0 %v432_v29  ;;  %v407_v17 = vld [vmem:[%s3142_s4 + $0x120] sm:$0xff]  ;;  %v406_v20 = vld [vmem:[%s3142_s4 + $0x118] sm:$0xff]  ;;  %v405_v22 = vld [vmem:[%s3142_s4 + $0x110] sm:$0xff] }
  0x31   :  { %329 = vmatpush2.msra.mxu1 %v278_v30  ;;  %482 = vmatpush2.msra.mxu0 %v431_v31  ;;  %v251_v23 = vld [vmem:[%s3140_s3 + $0x108] sm:$0xff]  ;;  %v250_v25 = vld [vmem:[%s3140_s3 + $0x100] sm:$0xff] }
  0x32   :  { %330 = vmatprep.subr.mxu1 %v277_v32  ;;  %483 = vmatprep.subr.mxu0 %v430_v33  ;;  %v404_v24 = vld [vmem:[%s3142_s4 + $0x108] sm:$0xff]  ;;  %v403_v26 = vld [vmem:[%s3142_s4 + $0x100] sm:$0xff] }
  0x33   :  { %331 = vmatpush2.msra.mxu1 %v276_v34  ;;  %484 = vmatpush2.msra.mxu0 %v429_v35 }
  0x34   :  { %332 = vmatprep.subr.mxu1 %v275_v36  ;;  %485 = vmatprep.subr.mxu0 %v428_v37 }
  0x35   :  { %333 = vmatpush2.msra.mxu1 %v274_v38  ;;  %486 = vmatpush2.msra.mxu0 %v427_v39  ;;  %v1451_v39 = vld [vmem:[%s3140_s3 + $0x2f8] sm:$0xff] }
  0x36   :  { %334 = vmatprep.subr.mxu1 %v273_v40  ;;  %487 = vmatprep.subr.mxu0 %v426_v41  ;;  %v1450_v40 = vld [vmem:[%s3140_s3 + $0x2f0] sm:$0xff]  ;;  %v1449_v41 = vld [vmem:[%s3140_s3 + $0x2e8] sm:$0xff] }
  0x37   :  { %335 = vmatpush2.msra.mxu1 %v272_v42  ;;  %488 = vmatpush2.msra.mxu0 %v425_v43  ;;  %v1448_v42 = vld [vmem:[%s3140_s3 + $0x2e0] sm:$0xff]  ;;  %v1447_v43 = vld [vmem:[%s3140_s3 + $0x2d8] sm:$0xff] }
  0x38   :  { %336 = vmatprep.subr.mxu1 %v271_v44  ;;  %489 = vmatprep.subr.mxu0 %v424_v45  ;;  %v1446_v44 = vld [vmem:[%s3140_s3 + $0x2d0] sm:$0xff]  ;;  %v1445_v45 = vld [vmem:[%s3140_s3 + $0x2c8] sm:$0xff] }
  0x39   :  { %337 = vmatpush2.msra.mxu1 %v270_v46  ;;  %490 = vmatpush2.msra.mxu0 %v423_v47  ;;  %v1444_v46 = vld [vmem:[%s3140_s3 + $0x2c0] sm:$0xff]  ;;  %v1443_v47 = vld [vmem:[%s3140_s3 + $0x2b8] sm:$0xff] }
  0x3a   :  { %338 = vmatprep.subr.mxu1 %v269_v48  ;;  %491 = vmatprep.subr.mxu0 %v422_v49  ;;  %v1442_v48 = vld [vmem:[%s3140_s3 + $0x2b0] sm:$0xff]  ;;  %v1441_v49 = vld [vmem:[%s3140_s3 + $0x2a8] sm:$0xff] }
  0x3b   :  { %339 = vmatpush2.msra.mxu1 %v268_v50  ;;  %492 = vmatpush2.msra.mxu0 %v421_v51  ;;  %v1440_v50 = vld [vmem:[%s3140_s3 + $0x2a0] sm:$0xff]  ;;  %v1439_v51 = vld [vmem:[%s3140_s3 + $0x298] sm:$0xff] }
  0x3c   :  { %340 = vmatprep.subr.mxu1 %v267_v52  ;;  %493 = vmatprep.subr.mxu0 %v420_v53  ;;  %v1438_v52 = vld [vmem:[%s3140_s3 + $0x290] sm:$0xff]  ;;  %v1437_v53 = vld [vmem:[%s3140_s3 + $0x288] sm:$0xff] }
  0x3d   :  { %341 = vmatpush2.msra.mxu1 %v266_v54  ;;  %494 = vmatpush2.msra.mxu0 %v419_v55  ;;  %v1436_v54 = vld [vmem:[%s3140_s3 + $0x280] sm:$0xff]  ;;  %v1435_v55 = vld [vmem:[%s3140_s3 + $0x278] sm:$0xff] }
  0x3e   :  { %342 = vmatprep.subr.mxu1 %v265_v56  ;;  %495 = vmatprep.subr.mxu0 %v418_v57  ;;  %v1434_v56 = vld [vmem:[%s3140_s3 + $0x270] sm:$0xff]  ;;  %v1433_v57 = vld [vmem:[%s3140_s3 + $0x268] sm:$0xff] }
  0x3f   :  { %343 = vmatpush2.msra.mxu1 %v264_v58  ;;  %496 = vmatpush2.msra.mxu0 %v417_v59  ;;  %v1432_v58 = vld [vmem:[%s3140_s3 + $0x260] sm:$0xff]  ;;  %v1431_v59 = vld [vmem:[%s3140_s3 + $0x258] sm:$0xff] }
  0x40   :  { %344 = vmatprep.subr.mxu1 %v263_v60  ;;  %497 = vmatprep.subr.mxu0 %v416_v61  ;;  %v1430_v60 = vld [vmem:[%s3140_s3 + $0x250] sm:$0xff]  ;;  %v1429_v61 = vld [vmem:[%s3140_s3 + $0x248] sm:$0xff] }
  0x41   :  { %345 = vmatpush2.msra.mxu1 %v262_v62  ;;  %498 = vmatpush2.msra.mxu0 %v415_v63  ;;  %v1428_v62 = vld [vmem:[%s3140_s3 + $0x240] sm:$0xff]  ;;  %v1427_v63 = vld [vmem:[%s3140_s3 + $0x238] sm:$0xff] }
  0x42   :  { %346 = vmatprep.subr.mxu1 %v261_v0  ;;  %499 = vmatprep.subr.mxu0 %v414_v1  ;;  %v1426_v0 = vld [vmem:[%s3140_s3 + $0x230] sm:$0xff]  ;;  %v1425_v1 = vld [vmem:[%s3140_s3 + $0x228] sm:$0xff] }
  0x43   :  { %347 = vmatpush2.msra.mxu1 %v260_v2  ;;  %500 = vmatpush2.msra.mxu0 %v413_v4  ;;  %v1424_v2 = vld [vmem:[%s3140_s3 + $0x220] sm:$0xff]  ;;  %v1423_v4 = vld [vmem:[%s3140_s3 + $0x218] sm:$0xff] }
  0x44   :  { %348 = vmatprep.subr.mxu1 %v259_v5  ;;  %501 = vmatprep.subr.mxu0 %v412_v6  ;;  %v1422_v5 = vld [vmem:[%s3140_s3 + $0x210] sm:$0xff]  ;;  %v1421_v6 = vld [vmem:[%s3140_s3 + $0x208] sm:$0xff] }
  0x45   :  { %349 = vmatpush2.msra.mxu1 %v258_v7  ;;  %502 = vmatpush2.msra.mxu0 %v411_v8  ;;  %v1420_v7 = vld [vmem:[%s3140_s3 + $0x200] sm:$0xff]  ;;  %v1483_v8 = vld [vmem:[%s3140_s3 + $0x3f8] sm:$0xff] }
  0x46   :  { %350 = vmatprep.subr.mxu1 %v257_v9  ;;  %503 = vmatprep.subr.mxu0 %v410_v10  ;;  %v1482_v9 = vld [vmem:[%s3140_s3 + $0x3f0] sm:$0xff]  ;;  %v1481_v10 = vld [vmem:[%s3140_s3 + $0x3e8] sm:$0xff] }
  0x47   :  { %351 = vmatpush2.msra.mxu1 %v256_v11  ;;  %504 = vmatpush2.msra.mxu0 %v409_v12  ;;  %v1480_v11 = vld [vmem:[%s3140_s3 + $0x3e0] sm:$0xff]  ;;  %v1479_v12 = vld [vmem:[%s3140_s3 + $0x3d8] sm:$0xff] }
  0x48   :  { %352 = vmatprep.subr.mxu1 %v255_v14  ;;  %505 = vmatprep.subr.mxu0 %v408_v15  ;;  %v1478_v14 = vld [vmem:[%s3140_s3 + $0x3d0] sm:$0xff]  ;;  %v1477_v15 = vld [vmem:[%s3140_s3 + $0x3c8] sm:$0xff] }
  0x49   :  { %353 = vmatpush2.msra.mxu1 %v254_v16  ;;  %506 = vmatpush2.msra.mxu0 %v407_v17  ;;  %v1476_v16 = vld [vmem:[%s3140_s3 + $0x3c0] sm:$0xff]  ;;  %v1475_v17 = vld [vmem:[%s3140_s3 + $0x3b8] sm:$0xff] }
  0x4a   :  { %354 = vmatprep.subr.mxu1 %v253_v18  ;;  %507 = vmatprep.subr.mxu0 %v406_v20  ;;  %v1474_v18 = vld [vmem:[%s3140_s3 + $0x3b0] sm:$0xff]  ;;  %v1473_v20 = vld [vmem:[%s3140_s3 + $0x3a8] sm:$0xff] }
  0x4b   :  { %355 = vmatpush2.msra.mxu1 %v252_v21  ;;  %508 = vmatpush2.msra.mxu0 %v405_v22  ;;  %v1472_v21 = vld [vmem:[%s3140_s3 + $0x3a0] sm:$0xff]  ;;  %v1471_v22 = vld [vmem:[%s3140_s3 + $0x398] sm:$0xff] }
  0x4c   :  { %356 = vmatprep.subr.mxu1 %v251_v23  ;;  %509 = vmatprep.subr.mxu0 %v404_v24  ;;  %v1470_v23 = vld [vmem:[%s3140_s3 + $0x390] sm:$0xff]  ;;  %v1469_v24 = vld [vmem:[%s3140_s3 + $0x388] sm:$0xff] }
  0x4d   :  { %357 = vmatpush2.msra.mxu1 %v250_v25  ;;  %510 = vmatpush2.msra.mxu0 %v403_v26  ;;  %v1468_v25 = vld [vmem:[%s3140_s3 + $0x380] sm:$0xff]  ;;  %v1467_v26 = vld [vmem:[%s3140_s3 + $0x378] sm:$0xff] }
  0x4e   :  { %711 = vmatprep.subr.mxu0 %v1451_v39  ;;  %v1458_v39 = vld [vmem:[%s3140_s3 + $0x330] sm:$0xff] }
  0xc8   :  { %v203_v27 = vpop.f32.mrf.mxu1 }
  0xca   :  { %v205_v28 = vpop.f32.mrf.mxu1 }
  0xcc   :  { %v209_v31 = vpop.f32.mrf.mxu1 }
  0xce   :  { %v2244_v29 = vpop.f32.mrf.mxu0  ;;  %v211_v35 = vpop.f32.mrf.mxu1 }
  0xcf   :  { %v214_v33 = vadd.f32 %v203_v27, %v2244_v29  ;;  %v1466_v27 = vld [vmem:[%s3140_s3 + $0x370] sm:$0xff] }
  0xd0   :  { %v2246_v30 = vpop.f32.mrf.mxu0 }
  0xd1   :  { %v215_v32 = vadd.f32 %v205_v28, %v2246_v30  ;;  %v1465_v28 = vld [vmem:[%s3140_s3 + $0x368] sm:$0xff] }
  0xd2   :  { %v2250_v34 = vpop.f32.mrf.mxu0 }
  0xd3   :  { %358 = vmatprep.mubr.f32.mxu1 %v215_v32  ;;  %511 = vmatprep.mubr.f32.mxu0 %v215_v32  ;;  %v216_v38 = vadd.f32 %v209_v31, %v2250_v34  ;;  %v1464_v31 = vld [vmem:[%s3140_s3 + $0x360] sm:$0xff]  ;;  %v1463_v32 = vld [vmem:[%s3140_s3 + $0x358] sm:$0xff] }
  0xd4   :  { %v2252_v36 = vpop.f32.mrf.mxu0  ;;  %359 = vmatmul.mubr.f32.vlgmr.msra.gmra.mxu1 %v214_v33  ;;  %512 = vmatmul.mubr.f32.vlgmr.msra.gmra.mxu0 %v214_v33  ;;  %v1462_v33 = vld [vmem:[%s3140_s3 + $0x350] sm:$0xff] }
  0xd5   :  { %v217_v37 = vadd.f32 %v211_v35, %v2252_v36  ;;  %712 = vmatpush1.msra.mxu0 %v1450_v40  ;;  %v1461_v35 = vld [vmem:[%s3140_s3 + $0x348] sm:$0xff]  ;;  %v284_v40 = vlaneseq }
  0xd6   :  { %713 = vmatprep.subr.mxu0 %v1449_v41 }
  0xd7   :  { %364 = vmatprep.mubr.f32.mxu1 %v217_v37  ;;  %517 = vmatprep.mubr.f32.mxu0 %v217_v37  ;;  %v1460_v37 = vld [vmem:[%s3140_s3 + $0x340] sm:$0xff]  ;;  %v285_v41 = vshrl.u32 %v284_v40, 7  ;;  %v1503_v40 = vld [vmem:[%s3142_s4 + $0x290] sm:$0xff] }
  0xd8   :  { %365 = vmatmul.mubr.f32.gmra.mxu1 %v216_v38  ;;  %518 = vmatmul.mubr.f32.gmra.mxu0 %v216_v38  ;;  %v1459_v38 = vld [vmem:[%s3140_s3 + $0x338] sm:$0xff] }
  0xd9   :  { %616 = vmatprep.mubr.f32.mxu1 %v1745_v3  ;;  %714 = vmatpush1.msra.mxu0 %v1448_v42  ;;  %v2431_v42 = vsub.s32 0, %v285_v41 }
  0xda   :  { %715 = vmatprep.subr.mxu0 %v1447_v43  ;;  %v435_v43 = vld [vmem:[%s3143_s6] sm:$0x3] }
  0xdb   :  { %716 = vmatpush1.msra.mxu0 %v1446_v44  ;;  %v2436_v44 = vsub.s32 1, %v285_v41  ;;  %v1502_v41 = vld [vmem:[%s3142_s4 + $0x288] sm:$0xff] }
  0xdc   :  { %717 = vmatprep.subr.mxu0 %v1445_v45  ;;  %v440_v45 = vrot.slane %v435_v43, %v2431_v42 }
  0xdd   :  { %718 = vmatpush1.msra.mxu0 %v1444_v46  ;;  %v444_v46 = vrot.slane %v435_v43, %v2436_v44  ;;  %v1501_v43 = vld [vmem:[%s3142_s4 + $0x280] sm:$0xff] }
  0xde   :  { %719 = vmatprep.subr.mxu0 %v1443_v47 }
  0xdf   :  { %720 = vmatpush1.msra.mxu0 %v1442_v48 }
  0xe0   :  { %721 = vmatprep.subr.mxu0 %v1441_v49 }
  0xe1   :  { %722 = vmatpush1.msra.mxu0 %v1440_v50 }
  0xe2   :  { %723 = vmatprep.subr.mxu0 %v1439_v51 }
  0xe3   :  { %724 = vmatpush1.msra.mxu0 %v1438_v52 }
  0xe4   :  { %725 = vmatprep.subr.mxu0 %v1437_v53 }
  0xe5   :  { %726 = vmatpush1.msra.mxu0 %v1436_v54 }
  0xe6   :  { %727 = vmatprep.subr.mxu0 %v1435_v55 }
  0xe7   :  { %728 = vmatpush1.msra.mxu0 %v1434_v56 }
  0xe8   :  { %729 = vmatprep.subr.mxu0 %v1433_v57 }
  0xe9   :  { %730 = vmatpush1.msra.mxu0 %v1432_v58 }
  0xea   :  { %731 = vmatprep.subr.mxu0 %v1431_v59 }
  0xeb   :  { %732 = vmatpush1.msra.mxu0 %v1430_v60 }
  0xec   :  { %733 = vmatprep.subr.mxu0 %v1429_v61 }
  0xed   :  { %734 = vmatpush1.msra.mxu0 %v1428_v62 }
  0xee   :  { %735 = vmatprep.subr.mxu0 %v1427_v63 }
  0xef   :  { %736 = vmatpush1.msra.mxu0 %v1426_v0 }
  0xf0   :  { %737 = vmatprep.subr.mxu0 %v1425_v1 }
  0xf1   :  { %738 = vmatpush1.msra.mxu0 %v1424_v2 }
  0xf2   :  { %739 = vmatprep.subr.mxu0 %v1423_v4 }
  0xf3   :  { %740 = vmatpush1.msra.mxu0 %v1422_v5 }
  0xf4   :  { %741 = vmatprep.subr.mxu0 %v1421_v6 }
  0xf5   :  { %742 = vmatpush1.msra.mxu0 %v1420_v7  ;;  %v282_v7 = vld [vmem:[%s3144_s5] sm:$0x3] }
  0xf6   :  { %743 = vmatprep.subr.mxu0 %v1483_v8 }
  0xf7   :  { %744 = vmatpush2.msra.mxu0 %v1482_v9  ;;  %v291_v9 = vrot.slane %v282_v7, %v2436_v44 }
  0xf8   :  { %745 = vmatprep.subr.mxu0 %v1481_v10 }
  0xf9   :  { %746 = vmatpush2.msra.mxu0 %v1480_v11  ;;  %v287_v11 = vrot.slane %v282_v7, %v2431_v42  ;;  %v1539_v7 = vld [vmem:[%s3142_s4 + $0x3b0] sm:$0xff] }
  0xfa   :  { %747 = vmatprep.subr.mxu0 %v1479_v12 }
  0xfb   :  { %748 = vmatpush2.msra.mxu0 %v1478_v14 }
  0xfc   :  { %749 = vmatprep.subr.mxu0 %v1477_v15 }
  0xfd   :  { %750 = vmatpush2.msra.mxu0 %v1476_v16 }
  0xfe   :  { %751 = vmatprep.subr.mxu0 %v1475_v17 }
  0xff   :  { %752 = vmatpush2.msra.mxu0 %v1474_v18 }
 0x100   :  { %753 = vmatprep.subr.mxu0 %v1473_v20 }
 0x101   :  { %754 = vmatpush2.msra.mxu0 %v1472_v21 }
 0x102   :  { %755 = vmatprep.subr.mxu0 %v1471_v22 }
 0x103   :  { %756 = vmatpush2.msra.mxu0 %v1470_v23 }
 0x104   :  { %757 = vmatprep.subr.mxu0 %v1469_v24 }
 0x105   :  { %758 = vmatpush2.msra.mxu0 %v1468_v25  ;;  %v1516_v25 = vld [vmem:[%s3142_s4 + $0x2f8] sm:$0xff] }
 0x106   :  { %759 = vmatprep.subr.mxu0 %v1467_v26  ;;  %v1515_v26 = vld [vmem:[%s3142_s4 + $0x2f0] sm:$0xff] }
 0x107   :  { %760 = vmatpush2.msra.mxu0 %v1466_v27  ;;  %v1514_v27 = vld [vmem:[%s3142_s4 + $0x2e8] sm:$0xff] }
 0x108   :  { %761 = vmatprep.subr.mxu0 %v1465_v28  ;;  %v1513_v28 = vld [vmem:[%s3142_s4 + $0x2e0] sm:$0xff] }
 0x109   :  { %762 = vmatpush2.msra.mxu0 %v1464_v31  ;;  %v1512_v31 = vld [vmem:[%s3142_s4 + $0x2d8] sm:$0xff] }
 0x10a   :  { %763 = vmatprep.subr.mxu0 %v1463_v32  ;;  %v1511_v32 = vld [vmem:[%s3142_s4 + $0x2d0] sm:$0xff] }
 0x10b   :  { %764 = vmatpush2.msra.mxu0 %v1462_v33  ;;  %v1509_v33 = vld [vmem:[%s3142_s4 + $0x2c0] sm:$0xff] }
 0x10c   :  { %765 = vmatprep.subr.mxu0 %v1461_v35  ;;  %v1508_v35 = vld [vmem:[%s3142_s4 + $0x2b8] sm:$0xff] }
 0x10d   :  { %766 = vmatpush2.msra.mxu0 %v1460_v37  ;;  %v1507_v37 = vld [vmem:[%s3142_s4 + $0x2b0] sm:$0xff] }
 0x10e   :  { %767 = vmatprep.subr.mxu0 %v1459_v38  ;;  %v1505_v38 = vld [vmem:[%s3142_s4 + $0x2a0] sm:$0xff] }
 0x10f   :  { %768 = vmatpush2.msra.mxu0 %v1458_v39  ;;  %v1504_v39 = vld [vmem:[%s3142_s4 + $0x298] sm:$0xff] }
 0x194   :  { %v513_v47 = vpop.f32.mrf.mxu0  ;;  %v360_v1 = vpop.f32.mrf.mxu1 }
 0x195   :  { %v514_v48 = vadd.f32 %v513_v47, %v440_v45  ;;  %v361_v21 = vadd.f32 %v360_v1, %v287_v11  ;;  %v1498_v47 = vld [vmem:[%s3142_s4 + $0x268] sm:$0xff]  ;;  %v1544_v1 = vld [vmem:[%s3142_s4 + $0x3d8] sm:$0xff] }
 0x196   :  { %v515_v49 = vpop.f32.mrf.mxu0  ;;  %v362_v5 = vpop.f32.mrf.mxu1 }
 0x197   :  { %v516_v50 = vadd.f32 %v515_v49, %v444_v46  ;;  %v1414_v51 = vmul.f32 -1.442695, %v514_v48  ;;  %v363_v18 = vadd.f32 %v362_v5, %v291_v9  ;;  %v1497_v48 = vld [vmem:[%s3142_s4 + $0x260] sm:$0xff]  ;;  %v1496_v49 = vld [vmem:[%s3142_s4 + $0x258] sm:$0xff] }
 0x198   :  { %v519_v52 = vpop.f32.mrf.mxu0  ;;  %v366_v6 = vpop.f32.mrf.mxu1  ;;  %v1541_v5 = vld [vmem:[%s3142_s4 + $0x3c0] sm:$0xff] }
 0x199   :  { %v1415_v53 = vmul.f32 -1.442695, %v516_v50  ;;  %v520_v54 = vadd.f32 %v519_v52, %v440_v45  ;;  %v367_v16 = vadd.f32 %v366_v6, %v287_v11  ;;  %v1500_v45 = vld [vmem:[%s3142_s4 + $0x278] sm:$0xff]  ;;  %v1495_v50 = vld [vmem:[%s3142_s4 + $0x250] sm:$0xff]  ;;  %v1493_v52 = vld [vmem:[%s3142_s4 + $0x240] sm:$0xff] }
 0x19a   :  { %v521_v55 = vpop.f32.mrf.mxu0  ;;  %v368_v8 = vpop.f32.mrf.mxu1  ;;  %v1540_v6 = vld [vmem:[%s3142_s4 + $0x3b8] sm:$0xff]  ;;  %v1535_v11 = vld [vmem:[%s3142_s4 + $0x390] sm:$0xff] }
 0x19b   :  { %1691 = vpow2.f32 %v1415_v53  ;;  %v1416_v56 = vmul.f32 -1.442695, %v520_v54  ;;  %v522_v57 = vadd.f32 %v521_v55, %v444_v46  ;;  %v369_v14 = vadd.f32 %v368_v8, %v291_v9  ;;  %v1499_v46 = vld [vmem:[%s3142_s4 + $0x270] sm:$0xff]  ;;  %v1492_v53 = vld [vmem:[%s3142_s4 + $0x238] sm:$0xff]  ;;  %v1490_v55 = vld [vmem:[%s3142_s4 + $0x228] sm:$0xff] }
 0x19c   :  { %1693 = vpow2.f32 %v1414_v51  ;;  %v1494_v51 = vld [vmem:[%s3142_s4 + $0x248] sm:$0xff]  ;;  %v1491_v54 = vld [vmem:[%s3142_s4 + $0x230] sm:$0xff]  ;;  %v1537_v9 = vld [vmem:[%s3142_s4 + $0x3a0] sm:$0xff] }
 0x19d   :  { %1695 = vpow2.f32 %v1416_v56  ;;  %v1417_v58 = vmul.f32 -1.442695, %v522_v57  ;;  %v1489_v56 = vld [vmem:[%s3142_s4 + $0x220] sm:$0xff]  ;;  %v1488_v57 = vld [vmem:[%s3142_s4 + $0x218] sm:$0xff]  ;;  %v1538_v8 = vld [vmem:[%s3142_s4 + $0x3a8] sm:$0xff] }
 0x19f   :  { %1697 = vpow2.f32 %v1417_v58  ;;  %v1487_v58 = vld [vmem:[%s3142_s4 + $0x210] sm:$0xff] }
 0x1a8   :  { %v1692_v59 = vpop.eup %1691 }
 0x1a9   :  { %v1694_v60 = vpop.eup %1693  ;;  %v537_v61 = vadd.f32 1.0, %v1692_v59  ;;  %v1486_v59 = vld [vmem:[%s3142_s4 + $0x208] sm:$0xff] }
 0x1aa   :  { %v1696_v62 = vpop.eup %1695  ;;  %v536_v2 = vadd.f32 1.0, %v1694_v60  ;;  %v1485_v60 = vld [vmem:[%s3142_s4 + $0x200] sm:$0xff] }
 0x1ab   :  { %v538_v63 = vadd.f32 1.0, %v1696_v62  ;;  %1699 = vrcp.f32 %v537_v61  ;;  %v1548_v61 = vld [vmem:[%s3142_s4 + $0x3f8] sm:$0xff]  ;;  %v1547_v62 = vld [vmem:[%s3142_s4 + $0x3f0] sm:$0xff] }
 0x1ac   :  { %v1698_v0 = vpop.eup %1697 }
 0x1ad   :  { %v539_v4 = vadd.f32 1.0, %v1698_v0  ;;  %1701 = vrcp.f32 %v538_v63  ;;  %v1546_v63 = vld [vmem:[%s3142_s4 + $0x3e8] sm:$0xff]  ;;  %v1545_v0 = vld [vmem:[%s3142_s4 + $0x3e0] sm:$0xff] }
 0x1af   :  { %1703 = vrcp.f32 %v539_v4  ;;  %v1542_v4 = vld [vmem:[%s3142_s4 + $0x3c8] sm:$0xff] }
 0x1b0   :  { %1705 = vrcp.f32 %v536_v2  ;;  %v1543_v2 = vld [vmem:[%s3142_s4 + $0x3d0] sm:$0xff] }
 0x1b8   :  { %v1700_v10 = vpop.eup %1699 }
 0x1b9   :  { %v2450_v23 = vmul.f32 %v1700_v10, %v363_v18  ;;  %v1536_v10 = vld [vmem:[%s3142_s4 + $0x398] sm:$0xff]  ;;  %v1529_v18 = vld [vmem:[%s3142_s4 + $0x360] sm:$0xff] }
 0x1ba   :  { %v1702_v12 = vpop.eup %1701 }
 0x1bb   :  { %v2447_v22 = vmul.f32 %v1702_v12, %v367_v16  ;;  %v1534_v12 = vld [vmem:[%s3142_s4 + $0x388] sm:$0xff]  ;;  %v1531_v16 = vld [vmem:[%s3142_s4 + $0x370] sm:$0xff] }
 0x1bc   :  { %v1704_v15 = vpop.eup %1703 }
 0x1bd   :  { %v1706_v17 = vpop.eup %1705  ;;  %v2445_v20 = vmul.f32 %v1704_v15, %v369_v14  ;;  %v1533_v14 = vld [vmem:[%s3142_s4 + $0x380] sm:$0xff]  ;;  %v1532_v15 = vld [vmem:[%s3142_s4 + $0x378] sm:$0xff] }
 0x1be   :  { %v2453_v24 = vmul.f32 %v1706_v17, %v361_v21  ;;  %v1530_v17 = vld [vmem:[%s3142_s4 + $0x368] sm:$0xff]  ;;  %v1528_v21 = vld [vmem:[%s3142_s4 + $0x358] sm:$0xff] }
 0x1bf   :  { %580 = vmatprep.subr.mxu1 %v2445_v20 }
 0x1c0   :  { %581 = vmatpush1.msra.mxu1 %v2447_v22 }
 0x1c1   :  { %582 = vmatprep.subr.mxu1 %v2450_v23 }
 0x1c2   :  { %583 = vmatpush1.msra.mxu1 %v2453_v24 }
 0x1c3   :  { %1418 = vmatmul.mubr.msk.f32.vlgmr.msra.gmra.mxu1 %vm130_vm0, %v1827_v13  ;;  %866 = vmatprep.subr.mxu1 %v1516_v25  ;;  %v1510_v13 = vld [vmem:[%s3142_s4 + $0x2c8] sm:$0xff]  ;;  %v1527_v25 = vld [vmem:[%s3142_s4 + $0x350] sm:$0xff] }
 0x1c4   :  { %622 = vmatprep.mubr.f32.mxu1 %v1745_v3  ;;  %867 = vmatpush1.msra.mxu1 %v1515_v26  ;;  %v1526_v26 = vld [vmem:[%s3142_s4 + $0x348] sm:$0xff] }
 0x1c5   :  { %868 = vmatprep.subr.mxu1 %v1514_v27  ;;  %v1525_v27 = vld [vmem:[%s3142_s4 + $0x340] sm:$0xff] }
 0x1c6   :  { %869 = vmatpush1.msra.mxu1 %v1513_v28  ;;  %v1524_v28 = vld [vmem:[%s3142_s4 + $0x338] sm:$0xff] }
 0x1c7   :  { %1419 = vmatmul.mubr.msk.f32.gmra.mxu1 %vm130_vm0, %v1850_v19  ;;  %870 = vmatprep.subr.mxu1 %v1512_v31  ;;  %v1506_v19 = vld [vmem:[%s3142_s4 + $0x2a8] sm:$0xff]  ;;  %v1523_v31 = vld [vmem:[%s3142_s4 + $0x330] sm:$0xff] }
 0x1c8   :  { %871 = vmatpush1.msra.mxu1 %v1511_v32  ;;  %v1457_v32 = vld [vmem:[%s3140_s3 + $0x328] sm:$0xff] }
 0x1c9   :  { %872 = vmatprep.subr.mxu1 %v1510_v13  ;;  %v1522_v13 = vld [vmem:[%s3142_s4 + $0x328] sm:$0xff]  ;;  %769 = vmatprep.subr.mxu0 %v1457_v32  ;;  %v1618_v32 = vld [vmem:[%s3140_s3 + $0x5f0] sm:$0xff] }
 0x1ca   :  { %873 = vmatpush1.msra.mxu1 %v1509_v33  ;;  %v1456_v33 = vld [vmem:[%s3140_s3 + $0x320] sm:$0xff] }
 0x1cb   :  { %874 = vmatprep.subr.mxu1 %v1508_v35  ;;  %v1521_v35 = vld [vmem:[%s3142_s4 + $0x320] sm:$0xff]  ;;  %770 = vmatpush2.msra.mxu0 %v1456_v33 }
 0x1cc   :  { %875 = vmatpush1.msra.mxu1 %v1507_v37  ;;  %v1455_v37 = vld [vmem:[%s3140_s3 + $0x318] sm:$0xff]  ;;  %v1616_v33 = vld [vmem:[%s3140_s3 + $0x5e0] sm:$0xff] }
 0x1cd   :  { %876 = vmatprep.subr.mxu1 %v1506_v19  ;;  %v1520_v19 = vld [vmem:[%s3142_s4 + $0x318] sm:$0xff]  ;;  %771 = vmatprep.subr.mxu0 %v1455_v37  ;;  %v1614_v37 = vld [vmem:[%s3140_s3 + $0x5d0] sm:$0xff] }
 0x1ce   :  { %877 = vmatpush1.msra.mxu1 %v1505_v38  ;;  %v1454_v38 = vld [vmem:[%s3140_s3 + $0x310] sm:$0xff] }
 0x1cf   :  { %878 = vmatprep.subr.mxu1 %v1504_v39  ;;  %v1519_v39 = vld [vmem:[%s3142_s4 + $0x310] sm:$0xff]  ;;  %772 = vmatpush2.msra.mxu0 %v1454_v38  ;;  %v1612_v38 = vld [vmem:[%s3140_s3 + $0x5c0] sm:$0xff] }
 0x1d0   :  { %879 = vmatpush1.msra.mxu1 %v1503_v40  ;;  %v1453_v40 = vld [vmem:[%s3140_s3 + $0x308] sm:$0xff] }
 0x1d1   :  { %880 = vmatprep.subr.mxu1 %v1502_v41  ;;  %v1518_v41 = vld [vmem:[%s3142_s4 + $0x308] sm:$0xff]  ;;  %773 = vmatprep.subr.mxu0 %v1453_v40  ;;  %v1610_v40 = vld [vmem:[%s3140_s3 + $0x5b0] sm:$0xff] }
 0x1d2   :  { %881 = vmatpush1.msra.mxu1 %v1501_v43  ;;  %v1452_v43 = vld [vmem:[%s3140_s3 + $0x300] sm:$0xff] }
 0x1d3   :  { %882 = vmatprep.subr.mxu1 %v1500_v45  ;;  %v1517_v45 = vld [vmem:[%s3142_s4 + $0x300] sm:$0xff]  ;;  %774 = vmatpush2.msra.mxu0 %v1452_v43 }
 0x1d4   :  { %883 = vmatpush1.msra.mxu1 %v1499_v46  ;;  %v1608_v43 = vld [vmem:[%s3140_s3 + $0x5a0] sm:$0xff] }
 0x1d5   :  { %884 = vmatprep.subr.mxu1 %v1498_v47 }
 0x1d6   :  { %885 = vmatpush1.msra.mxu1 %v1497_v48 }
 0x1d7   :  { %886 = vmatprep.subr.mxu1 %v1496_v49 }
 0x1d8   :  { %887 = vmatpush1.msra.mxu1 %v1495_v50 }
 0x1d9   :  { %888 = vmatprep.subr.mxu1 %v1494_v51 }
 0x1da   :  { %889 = vmatpush1.msra.mxu1 %v1493_v52 }
 0x1db   :  { %890 = vmatprep.subr.mxu1 %v1492_v53 }
 0x1dc   :  { %891 = vmatpush1.msra.mxu1 %v1491_v54  ;;  %v1587_v54 = vld [vmem:[%s3140_s3 + $0x4f8] sm:$0xff] }
 0x1dd   :  { %892 = vmatprep.subr.mxu1 %v1490_v55  ;;  %v1586_v55 = vld [vmem:[%s3140_s3 + $0x4f0] sm:$0xff] }
 0x1de   :  { %893 = vmatpush1.msra.mxu1 %v1489_v56  ;;  %v1585_v56 = vld [vmem:[%s3140_s3 + $0x4e8] sm:$0xff] }
 0x1df   :  { %894 = vmatprep.subr.mxu1 %v1488_v57  ;;  %v1584_v57 = vld [vmem:[%s3140_s3 + $0x4e0] sm:$0xff] }
 0x1e0   :  { %895 = vmatpush1.msra.mxu1 %v1487_v58  ;;  %v1583_v58 = vld [vmem:[%s3140_s3 + $0x4d8] sm:$0xff] }
 0x1e1   :  { %896 = vmatprep.subr.mxu1 %v1486_v59  ;;  %v1582_v59 = vld [vmem:[%s3140_s3 + $0x4d0] sm:$0xff] }
 0x1e2   :  { %897 = vmatpush1.msra.mxu1 %v1485_v60  ;;  %v1581_v60 = vld [vmem:[%s3140_s3 + $0x4c8] sm:$0xff] }
 0x1e3   :  { %898 = vmatprep.subr.mxu1 %v1548_v61  ;;  %v1580_v61 = vld [vmem:[%s3140_s3 + $0x4c0] sm:$0xff] }
 0x1e4   :  { %899 = vmatpush2.msra.mxu1 %v1547_v62  ;;  %v1579_v62 = vld [vmem:[%s3140_s3 + $0x4b8] sm:$0xff] }
 0x1e5   :  { %900 = vmatprep.subr.mxu1 %v1546_v63  ;;  %v1578_v63 = vld [vmem:[%s3140_s3 + $0x4b0] sm:$0xff] }
 0x1e6   :  { %901 = vmatpush2.msra.mxu1 %v1545_v0  ;;  %v1577_v0 = vld [vmem:[%s3140_s3 + $0x4a8] sm:$0xff] }
 0x1e7   :  { %902 = vmatprep.subr.mxu1 %v1544_v1  ;;  %v1576_v1 = vld [vmem:[%s3140_s3 + $0x4a0] sm:$0xff] }
 0x1e8   :  { %903 = vmatpush2.msra.mxu1 %v1543_v2  ;;  %v1575_v2 = vld [vmem:[%s3140_s3 + $0x498] sm:$0xff] }
 0x1e9   :  { %904 = vmatprep.subr.mxu1 %v1542_v4  ;;  %v1574_v4 = vld [vmem:[%s3140_s3 + $0x490] sm:$0xff] }
 0x1ea   :  { %905 = vmatpush2.msra.mxu1 %v1541_v5  ;;  %v1573_v5 = vld [vmem:[%s3140_s3 + $0x488] sm:$0xff] }
 0x1eb   :  { %906 = vmatprep.subr.mxu1 %v1540_v6  ;;  %v1572_v6 = vld [vmem:[%s3140_s3 + $0x480] sm:$0xff] }
 0x1ec   :  { %907 = vmatpush2.msra.mxu1 %v1539_v7  ;;  %v1571_v7 = vld [vmem:[%s3140_s3 + $0x478] sm:$0xff] }
 0x1ed   :  { %908 = vmatprep.subr.mxu1 %v1538_v8  ;;  %v1570_v8 = vld [vmem:[%s3140_s3 + $0x470] sm:$0xff] }
 0x1ee   :  { %909 = vmatpush2.msra.mxu1 %v1537_v9  ;;  %v1569_v9 = vld [vmem:[%s3140_s3 + $0x468] sm:$0xff] }
 0x1ef   :  { %910 = vmatprep.subr.mxu1 %v1536_v10  ;;  %v1568_v10 = vld [vmem:[%s3140_s3 + $0x460] sm:$0xff] }
 0x1f0   :  { %911 = vmatpush2.msra.mxu1 %v1535_v11  ;;  %v1567_v11 = vld [vmem:[%s3140_s3 + $0x458] sm:$0xff] }
 0x1f1   :  { %912 = vmatprep.subr.mxu1 %v1534_v12  ;;  %v1566_v12 = vld [vmem:[%s3140_s3 + $0x450] sm:$0xff] }
 0x1f2   :  { %913 = vmatpush2.msra.mxu1 %v1533_v14  ;;  %v1565_v14 = vld [vmem:[%s3140_s3 + $0x448] sm:$0xff] }
 0x1f3   :  { %914 = vmatprep.subr.mxu1 %v1532_v15  ;;  %v1564_v15 = vld [vmem:[%s3140_s3 + $0x440] sm:$0xff] }
 0x1f4   :  { %915 = vmatpush2.msra.mxu1 %v1531_v16  ;;  %v1563_v16 = vld [vmem:[%s3140_s3 + $0x438] sm:$0xff] }
 0x1f5   :  { %916 = vmatprep.subr.mxu1 %v1530_v17  ;;  %v1562_v17 = vld [vmem:[%s3140_s3 + $0x430] sm:$0xff] }
 0x1f6   :  { %917 = vmatpush2.msra.mxu1 %v1529_v18  ;;  %v1561_v18 = vld [vmem:[%s3140_s3 + $0x428] sm:$0xff] }
 0x1f7   :  { %918 = vmatprep.subr.mxu1 %v1528_v21  ;;  %v1560_v21 = vld [vmem:[%s3140_s3 + $0x420] sm:$0xff] }
 0x1f8   :  { %919 = vmatpush2.msra.mxu1 %v1527_v25  ;;  %v1559_v25 = vld [vmem:[%s3140_s3 + $0x418] sm:$0xff] }
 0x1f9   :  { %920 = vmatprep.subr.mxu1 %v1526_v26  ;;  %v1558_v26 = vld [vmem:[%s3140_s3 + $0x410] sm:$0xff] }
 0x1fa   :  { %921 = vmatpush2.msra.mxu1 %v1525_v27  ;;  %v1557_v27 = vld [vmem:[%s3140_s3 + $0x408] sm:$0xff] }
 0x1fb   :  { %922 = vmatprep.subr.mxu1 %v1524_v28  ;;  %v1556_v28 = vld [vmem:[%s3140_s3 + $0x400] sm:$0xff] }
 0x1fc   :  { %923 = vmatpush2.msra.mxu1 %v1523_v31  ;;  %v1619_v31 = vld [vmem:[%s3140_s3 + $0x5f8] sm:$0xff] }
 0x1fd   :  { %924 = vmatprep.subr.mxu1 %v1522_v13  ;;  %v1617_v13 = vld [vmem:[%s3140_s3 + $0x5e8] sm:$0xff] }
 0x1fe   :  { %925 = vmatpush2.msra.mxu1 %v1521_v35  ;;  %v1615_v35 = vld [vmem:[%s3140_s3 + $0x5d8] sm:$0xff] }
 0x1ff   :  { %926 = vmatprep.subr.mxu1 %v1520_v19  ;;  %v1613_v19 = vld [vmem:[%s3140_s3 + $0x5c8] sm:$0xff] }
 0x200   :  { %927 = vmatpush2.msra.mxu1 %v1519_v39  ;;  %v1611_v39 = vld [vmem:[%s3140_s3 + $0x5b8] sm:$0xff] }
 0x201   :  { %928 = vmatprep.subr.mxu1 %v1518_v41  ;;  %v1609_v41 = vld [vmem:[%s3140_s3 + $0x5a8] sm:$0xff] }
 0x202   :  { %929 = vmatpush2.msra.mxu1 %v1517_v45  ;;  %v1607_v45 = vld [vmem:[%s3140_s3 + $0x598] sm:$0xff] }
 0x203   :  { %1134 = vmatprep.subr.mxu1 %v1587_v54  ;;  %v1598_v54 = vld [vmem:[%s3140_s3 + $0x550] sm:$0xff] }
 0x283   :  { %v618_v46 = vpop.f32.mrf.mxu1 }
 0x284   :  { %v629_v49 = vadd.f32 %v618_v46, %v2244_v29  ;;  %v1606_v46 = vld [vmem:[%s3140_s3 + $0x590] sm:$0xff] }
 0x285   :  { %v620_v47 = vpop.f32.mrf.mxu1 }
 0x286   :  { %v630_v48 = vadd.f32 %v620_v47, %v2246_v30  ;;  %v1605_v47 = vld [vmem:[%s3140_s3 + $0x588] sm:$0xff] }
 0x287   :  { %v624_v50 = vpop.f32.mrf.mxu1 }
 0x288   :  { %775 = vmatprep.mubr.f32.mxu0 %v630_v48  ;;  %930 = vmatprep.mubr.f32.mxu1 %v630_v48  ;;  %v631_v53 = vadd.f32 %v624_v50, %v2250_v34  ;;  %v1604_v48 = vld [vmem:[%s3140_s3 + $0x580] sm:$0xff]  ;;  %v1602_v50 = vld [vmem:[%s3140_s3 + $0x570] sm:$0xff] }
 0x289   :  { %v626_v51 = vpop.f32.mrf.mxu1  ;;  %776 = vmatmul.mubr.f32.vlgmr.msra.gmra.mxu0 %v629_v49  ;;  %931 = vmatmul.mubr.f32.vlgmr.msra.gmra.mxu1 %v629_v49  ;;  %v1603_v49 = vld [vmem:[%s3140_s3 + $0x578] sm:$0xff] }
 0x28a   :  { %v632_v52 = vadd.f32 %v626_v51, %v2252_v36  ;;  %1135 = vmatpush1.msra.mxu1 %v1586_v55  ;;  %v1601_v51 = vld [vmem:[%s3140_s3 + $0x568] sm:$0xff] }
 0x28b   :  { %1136 = vmatprep.subr.mxu1 %v1585_v56  ;;  %v1597_v55 = vld [vmem:[%s3140_s3 + $0x548] sm:$0xff]  ;;  %v1596_v56 = vld [vmem:[%s3140_s3 + $0x540] sm:$0xff] }
 0x28c   :  { %781 = vmatprep.mubr.f32.mxu0 %v632_v52  ;;  %936 = vmatprep.mubr.f32.mxu1 %v632_v52  ;;  %v1600_v52 = vld [vmem:[%s3140_s3 + $0x560] sm:$0xff] }
 0x28d   :  { %782 = vmatmul.mubr.f32.gmra.mxu0 %v631_v53  ;;  %937 = vmatmul.mubr.f32.gmra.mxu1 %v631_v53  ;;  %v1599_v53 = vld [vmem:[%s3140_s3 + $0x558] sm:$0xff] }
 0x28e   :  { %1039 = vmatprep.mubr.f32.mxu0 %v1745_v3  ;;  %1137 = vmatpush1.msra.mxu1 %v1584_v57  ;;  %v1595_v57 = vld [vmem:[%s3140_s3 + $0x538] sm:$0xff] }
 0x28f   :  { %1138 = vmatprep.subr.mxu1 %v1583_v58  ;;  %v1594_v58 = vld [vmem:[%s3140_s3 + $0x530] sm:$0xff] }
 0x290   :  { %1139 = vmatpush1.msra.mxu1 %v1582_v59  ;;  %v1549_v59 = vld [vmem:[%s3143_s6 + $0x2] sm:$0x3] }
 0x291   :  { %1140 = vmatprep.subr.mxu1 %v1581_v60  ;;  %v859_v60 = vrot.slane %v1549_v59, %v2431_v42 }
 0x292   :  { %1141 = vmatpush1.msra.mxu1 %v1580_v61  ;;  %v863_v61 = vrot.slane %v1549_v59, %v2436_v44  ;;  %v1642_v59 = vld [vmem:[%s3142_s4 + $0x4a8] sm:$0xff] }
 0x293   :  { %1142 = vmatprep.subr.mxu1 %v1579_v62 }
 0x294   :  { %1143 = vmatpush1.msra.mxu1 %v1578_v63 }
 0x295   :  { %1144 = vmatprep.subr.mxu1 %v1577_v0 }
 0x296   :  { %1145 = vmatpush1.msra.mxu1 %v1576_v1 }
 0x297   :  { %1146 = vmatprep.subr.mxu1 %v1575_v2 }
 0x298   :  { %1147 = vmatpush1.msra.mxu1 %v1574_v4 }
 0x299   :  { %1148 = vmatprep.subr.mxu1 %v1573_v5 }
 0x29a   :  { %1149 = vmatpush1.msra.mxu1 %v1572_v6 }
 0x29b   :  { %1150 = vmatprep.subr.mxu1 %v1571_v7 }
 0x29c   :  { %1151 = vmatpush1.msra.mxu1 %v1570_v8 }
 0x29d   :  { %1152 = vmatprep.subr.mxu1 %v1569_v9 }
 0x29e   :  { %1153 = vmatpush1.msra.mxu1 %v1568_v10 }
 0x29f   :  { %1154 = vmatprep.subr.mxu1 %v1567_v11 }
 0x2a0   :  { %1155 = vmatpush1.msra.mxu1 %v1566_v12 }
 0x2a1   :  { %1156 = vmatprep.subr.mxu1 %v1565_v14 }
 0x2a2   :  { %1157 = vmatpush1.msra.mxu1 %v1564_v15 }
 0x2a3   :  { %1158 = vmatprep.subr.mxu1 %v1563_v16 }
 0x2a4   :  { %1159 = vmatpush1.msra.mxu1 %v1562_v17 }
 0x2a5   :  { %1160 = vmatprep.subr.mxu1 %v1561_v18 }
 0x2a6   :  { %1161 = vmatpush1.msra.mxu1 %v1560_v21 }
 0x2a7   :  { %1162 = vmatprep.subr.mxu1 %v1559_v25 }
 0x2a8   :  { %1163 = vmatpush1.msra.mxu1 %v1558_v26 }
 0x2a9   :  { %1164 = vmatprep.subr.mxu1 %v1557_v27 }
 0x2aa   :  { %1165 = vmatpush1.msra.mxu1 %v1556_v28  ;;  %v1484_v28 = vld [vmem:[%s3144_s5 + $0x2] sm:$0x3] }
 0x2ab   :  { %1166 = vmatprep.subr.mxu1 %v1619_v31 }
 0x2ac   :  { %1167 = vmatpush2.msra.mxu1 %v1618_v32  ;;  %v708_v32 = vrot.slane %v1484_v28, %v2436_v44 }
 0x2ad   :  { %1168 = vmatprep.subr.mxu1 %v1617_v13 }
 0x2ae   :  { %1169 = vmatpush2.msra.mxu1 %v1616_v33  ;;  %v704_v33 = vrot.slane %v1484_v28, %v2431_v42  ;;  %v1680_v28 = vld [vmem:[%s3142_s4 + $0x5d8] sm:$0xff] }
 0x2af   :  { %1170 = vmatprep.subr.mxu1 %v1615_v35 }
 0x2b0   :  { %1171 = vmatpush2.msra.mxu1 %v1614_v37 }
 0x2b1   :  { %1172 = vmatprep.subr.mxu1 %v1613_v19 }
 0x2b2   :  { %1173 = vmatpush2.msra.mxu1 %v1612_v38 }
 0x2b3   :  { %1174 = vmatprep.subr.mxu1 %v1611_v39 }
 0x2b4   :  { %1175 = vmatpush2.msra.mxu1 %v1610_v40 }
 0x2b5   :  { %1176 = vmatprep.subr.mxu1 %v1609_v41 }
 0x2b6   :  { %1177 = vmatpush2.msra.mxu1 %v1608_v43 }
 0x2b7   :  { %1178 = vmatprep.subr.mxu1 %v1607_v45 }
 0x2b8   :  { %1179 = vmatpush2.msra.mxu1 %v1606_v46 }
 0x2b9   :  { %1180 = vmatprep.subr.mxu1 %v1605_v47 }
 0x2ba   :  { %1181 = vmatpush2.msra.mxu1 %v1604_v48  ;;  %v1652_v48 = vld [vmem:[%s3142_s4 + $0x4f8] sm:$0xff] }
 0x2bb   :  { %1182 = vmatprep.subr.mxu1 %v1603_v49  ;;  %v1651_v49 = vld [vmem:[%s3142_s4 + $0x4f0] sm:$0xff] }
 0x2bc   :  { %1183 = vmatpush2.msra.mxu1 %v1602_v50  ;;  %v1650_v50 = vld [vmem:[%s3142_s4 + $0x4e8] sm:$0xff] }
 0x2bd   :  { %1184 = vmatprep.subr.mxu1 %v1601_v51  ;;  %v1739_v51 = vld [vmem:[%s3139_s2] sm:$0xff] }
 0x2be   :  { %1185 = vmatpush2.msra.mxu1 %v1600_v52  ;;  %v1649_v52 = vld [vmem:[%s3142_s4 + $0x4e0] sm:$0xff] }
 0x2bf   :  { %1186 = vmatprep.subr.mxu1 %v1599_v53  ;;  %v1648_v53 = vld [vmem:[%s3142_s4 + $0x4d8] sm:$0xff] }
 0x2c0   :  { %1187 = vmatpush2.msra.mxu1 %v1598_v54  ;;  %v1647_v54 = vld [vmem:[%s3142_s4 + $0x4d0] sm:$0xff] }
 0x2c1   :  { %1188 = vmatprep.subr.mxu1 %v1597_v55  ;;  %v1646_v55 = vld [vmem:[%s3142_s4 + $0x4c8] sm:$0xff] }
 0x2c2   :  { %1189 = vmatpush2.msra.mxu1 %v1596_v56  ;;  %v1740_v56 = vld [vmem:[%s3139_s2 + $0x8] sm:$0xff] }
 0x2c3   :  { %1190 = vmatprep.subr.mxu1 %v1595_v57  ;;  %v1644_v57 = vld [vmem:[%s3142_s4 + $0x4b8] sm:$0xff] }
 0x2c4   :  { %1191 = vmatpush2.msra.mxu1 %v1594_v58  ;;  %v1643_v58 = vld [vmem:[%s3142_s4 + $0x4b0] sm:$0xff] }
 0x349   :  { %v932_v62 = vpop.f32.mrf.mxu1  ;;  %v777_v18 = vpop.f32.mrf.mxu0 }
 0x34a   :  { %v933_v63 = vadd.f32 %v932_v62, %v859_v60  ;;  %v778_v43 = vadd.f32 %v777_v18, %v704_v33  ;;  %v1639_v62 = vld [vmem:[%s3142_s4 + $0x490] sm:$0xff]  ;;  %v1621_v18 = vld [vmem:[%s3142_s4 + $0x400] sm:$0xff] }
 0x34b   :  { %v934_v0 = vpop.f32.mrf.mxu1  ;;  %v779_v26 = vpop.f32.mrf.mxu0 }
 0x34c   :  { %v935_v1 = vadd.f32 %v934_v0, %v863_v61  ;;  %v1550_v2 = vmul.f32 -1.442695, %v933_v63  ;;  %v780_v40 = vadd.f32 %v779_v26, %v708_v32  ;;  %v1638_v63 = vld [vmem:[%s3142_s4 + $0x488] sm:$0xff]  ;;  %v1637_v0 = vld [vmem:[%s3142_s4 + $0x480] sm:$0xff] }
 0x34d   :  { %v938_v4 = vpop.f32.mrf.mxu1  ;;  %v783_v27 = vpop.f32.mrf.mxu0  ;;  %v1682_v26 = vld [vmem:[%s3142_s4 + $0x5e8] sm:$0xff] }
 0x34e   :  { %v1551_v5 = vmul.f32 -1.442695, %v935_v1  ;;  %v939_v6 = vadd.f32 %v938_v4, %v859_v60  ;;  %v784_v38 = vadd.f32 %v783_v27, %v704_v33  ;;  %v1641_v60 = vld [vmem:[%s3142_s4 + $0x4a0] sm:$0xff]  ;;  %v1636_v1 = vld [vmem:[%s3142_s4 + $0x478] sm:$0xff]  ;;  %v1634_v4 = vld [vmem:[%s3142_s4 + $0x468] sm:$0xff] }
 0x34f   :  { %v940_v7 = vpop.f32.mrf.mxu1  ;;  %v785_v31 = vpop.f32.mrf.mxu0  ;;  %v1681_v27 = vld [vmem:[%s3142_s4 + $0x5e0] sm:$0xff]  ;;  %v1676_v33 = vld [vmem:[%s3142_s4 + $0x5b8] sm:$0xff] }
 0x350   :  { %1707 = vpow2.f32 %v1551_v5  ;;  %v1552_v8 = vmul.f32 -1.442695, %v939_v6  ;;  %v941_v9 = vadd.f32 %v940_v7, %v863_v61  ;;  %v786_v37 = vadd.f32 %v785_v31, %v708_v32  ;;  %v1640_v61 = vld [vmem:[%s3142_s4 + $0x498] sm:$0xff]  ;;  %v1633_v5 = vld [vmem:[%s3142_s4 + $0x460] sm:$0xff]  ;;  %v1631_v7 = vld [vmem:[%s3142_s4 + $0x450] sm:$0xff] }
 0x351   :  { %1709 = vpow2.f32 %v1550_v2  ;;  %v1635_v2 = vld [vmem:[%s3142_s4 + $0x470] sm:$0xff]  ;;  %v1632_v6 = vld [vmem:[%s3142_s4 + $0x458] sm:$0xff]  ;;  %v1678_v32 = vld [vmem:[%s3142_s4 + $0x5c8] sm:$0xff] }
 0x352   :  { %1711 = vpow2.f32 %v1552_v8  ;;  %v1553_v10 = vmul.f32 -1.442695, %v941_v9  ;;  %v1630_v8 = vld [vmem:[%s3142_s4 + $0x448] sm:$0xff]  ;;  %v1629_v9 = vld [vmem:[%s3142_s4 + $0x440] sm:$0xff]  ;;  %v1679_v31 = vld [vmem:[%s3142_s4 + $0x5d0] sm:$0xff] }
 0x354   :  { %1713 = vpow2.f32 %v1553_v10  ;;  %v1628_v10 = vld [vmem:[%s3142_s4 + $0x438] sm:$0xff] }
 0x35d   :  { %v1708_v11 = vpop.eup %1707 }
 0x35e   :  { %v1710_v12 = vpop.eup %1709  ;;  %v956_v14 = vadd.f32 1.0, %v1708_v11  ;;  %v1627_v11 = vld [vmem:[%s3142_s4 + $0x430] sm:$0xff] }
 0x35f   :  { %v1712_v15 = vpop.eup %1711  ;;  %v955_v21 = vadd.f32 1.0, %v1710_v12  ;;  %v1626_v12 = vld [vmem:[%s3142_s4 + $0x428] sm:$0xff] }
 0x360   :  { %v957_v16 = vadd.f32 1.0, %v1712_v15  ;;  %1715 = vrcp.f32 %v956_v14  ;;  %v1625_v14 = vld [vmem:[%s3142_s4 + $0x420] sm:$0xff]  ;;  %v1624_v15 = vld [vmem:[%s3142_s4 + $0x418] sm:$0xff] }
 0x361   :  { %v1714_v17 = vpop.eup %1713 }
 0x362   :  { %v958_v25 = vadd.f32 1.0, %v1714_v17  ;;  %1717 = vrcp.f32 %v957_v16  ;;  %v1623_v16 = vld [vmem:[%s3142_s4 + $0x410] sm:$0xff]  ;;  %v1622_v17 = vld [vmem:[%s3142_s4 + $0x408] sm:$0xff] }
 0x364   :  { %1719 = vrcp.f32 %v958_v25  ;;  %v1683_v25 = vld [vmem:[%s3142_s4 + $0x5f0] sm:$0xff] }
 0x365   :  { %1721 = vrcp.f32 %v955_v21  ;;  %v1684_v21 = vld [vmem:[%s3142_s4 + $0x5f8] sm:$0xff] }
 0x36d   :  { %v1716_v13 = vpop.eup %1715 }
 0x36e   :  { %v2866_v46 = vmul.f32 %v1716_v13, %v780_v40  ;;  %v1677_v13 = vld [vmem:[%s3142_s4 + $0x5c0] sm:$0xff]  ;;  %v1670_v40 = vld [vmem:[%s3142_s4 + $0x588] sm:$0xff] }
 0x36f   :  { %v1718_v35 = vpop.eup %1717 }
 0x370   :  { %v2863_v45 = vmul.f32 %v1718_v35, %v784_v38  ;;  %v1675_v35 = vld [vmem:[%s3142_s4 + $0x5b0] sm:$0xff]  ;;  %v1672_v38 = vld [vmem:[%s3142_s4 + $0x598] sm:$0xff] }
 0x371   :  { %v1720_v19 = vpop.eup %1719 }
 0x372   :  { %v1722_v39 = vpop.eup %1721  ;;  %v2861_v41 = vmul.f32 %v1720_v19, %v786_v37  ;;  %v1674_v37 = vld [vmem:[%s3142_s4 + $0x5a8] sm:$0xff]  ;;  %v1673_v19 = vld [vmem:[%s3142_s4 + $0x5a0] sm:$0xff] }
 0x373   :  { %v2869_v47 = vmul.f32 %v1722_v39, %v778_v43  ;;  %v1671_v39 = vld [vmem:[%s3142_s4 + $0x590] sm:$0xff]  ;;  %v1669_v43 = vld [vmem:[%s3142_s4 + $0x580] sm:$0xff] }
 0x374   :  { %1003 = vmatprep.subr.mxu0 %v2861_v41 }
 0x375   :  { %1004 = vmatpush1.msra.mxu0 %v2863_v45 }
 0x376   :  { %1005 = vmatprep.subr.mxu0 %v2866_v46 }
 0x377   :  { %1006 = vmatpush1.msra.mxu0 %v2869_v47 }
 0x378   :  { %1554 = vmatmul.mubr.msk.f32.vlgmr.msra.gmra.mxu0 %vm130_vm0, %v1739_v51  ;;  %1289 = vmatprep.subr.mxu0 %v1652_v48  ;;  %v1668_v48 = vld [vmem:[%s3142_s4 + $0x578] sm:$0xff]  ;;  %v1665_v51 = vld [vmem:[%s3142_s4 + $0x560] sm:$0xff] }
 0x379   :  { %1045 = vmatprep.mubr.f32.mxu0 %v1745_v3  ;;  %1290 = vmatpush1.msra.mxu0 %v1651_v49  ;;  %v1645_v3 = vld [vmem:[%s3142_s4 + $0x4c0] sm:$0xff]  ;;  %v1667_v49 = vld [vmem:[%s3142_s4 + $0x570] sm:$0xff] }
 0x37a   :  { %1291 = vmatprep.subr.mxu0 %v1650_v50  ;;  %v1666_v50 = vld [vmem:[%s3142_s4 + $0x568] sm:$0xff] }
 0x37b   :  { %1292 = vmatpush1.msra.mxu0 %v1649_v52  ;;  %v1664_v52 = vld [vmem:[%s3142_s4 + $0x558] sm:$0xff] }
 0x37c   :  { %1555 = vmatmul.mubr.msk.f32.gmra.mxu0 %vm130_vm0, %v1740_v56  ;;  %1293 = vmatprep.subr.mxu0 %v1648_v53  ;;  %v1663_v53 = vld [vmem:[%s3142_s4 + $0x550] sm:$0xff]  ;;  %v1660_v56 = vld [vmem:[%s3142_s4 + $0x538] sm:$0xff] }
 0x37d   :  { %1294 = vmatpush1.msra.mxu0 %v1647_v54  ;;  %v1662_v54 = vld [vmem:[%s3142_s4 + $0x548] sm:$0xff] }
 0x37e   :  { %1295 = vmatprep.subr.mxu0 %v1646_v55  ;;  %v1661_v55 = vld [vmem:[%s3142_s4 + $0x540] sm:$0xff] }
 0x37f   :  { %1296 = vmatpush1.msra.mxu0 %v1645_v3  ;;  %v1659_v3 = vld [vmem:[%s3142_s4 + $0x530] sm:$0xff] }
 0x380   :  { %1297 = vmatprep.subr.mxu0 %v1644_v57  ;;  %v1593_v57 = vld [vmem:[%s3140_s3 + $0x528] sm:$0xff] }
 0x381   :  { %1298 = vmatpush1.msra.mxu0 %v1643_v58  ;;  %v1658_v58 = vld [vmem:[%s3142_s4 + $0x528] sm:$0xff]  ;;  %1192 = vmatprep.subr.mxu1 %v1593_v57 }
 0x382   :  { %1299 = vmatprep.subr.mxu0 %v1642_v59  ;;  %v1592_v59 = vld [vmem:[%s3140_s3 + $0x520] sm:$0xff] }
 0x383   :  { %1300 = vmatpush1.msra.mxu0 %v1641_v60  ;;  %v1657_v60 = vld [vmem:[%s3142_s4 + $0x520] sm:$0xff]  ;;  %1193 = vmatpush2.msra.mxu1 %v1592_v59  ;;  %v972_v59 = vmax.f32 %v2450_v23, %v2866_v46 }
 0x384   :  { %1301 = vmatprep.subr.mxu0 %v1640_v61  ;;  %v1591_v61 = vld [vmem:[%s3140_s3 + $0x518] sm:$0xff] }
 0x385   :  { %1302 = vmatpush1.msra.mxu0 %v1639_v62  ;;  %v1656_v62 = vld [vmem:[%s3142_s4 + $0x518] sm:$0xff]  ;;  %1194 = vmatprep.subr.mxu1 %v1591_v61 }
 0x386   :  { %1303 = vmatprep.subr.mxu0 %v1638_v63  ;;  %v1590_v63 = vld [vmem:[%s3140_s3 + $0x510] sm:$0xff] }
 0x387   :  { %1304 = vmatpush1.msra.mxu0 %v1637_v0  ;;  %v1655_v0 = vld [vmem:[%s3142_s4 + $0x510] sm:$0xff]  ;;  %1195 = vmatpush2.msra.mxu1 %v1590_v63 }
 0x388   :  { %1305 = vmatprep.subr.mxu0 %v1636_v1  ;;  %v1589_v1 = vld [vmem:[%s3140_s3 + $0x508] sm:$0xff] }
 0x389   :  { %1306 = vmatpush1.msra.mxu0 %v1635_v2  ;;  %v1654_v2 = vld [vmem:[%s3142_s4 + $0x508] sm:$0xff]  ;;  %1196 = vmatprep.subr.mxu1 %v1589_v1 }
 0x38a   :  { %1307 = vmatprep.subr.mxu0 %v1634_v4  ;;  %v1588_v4 = vld [vmem:[%s3140_s3 + $0x500] sm:$0xff] }
 0x38b   :  { %1308 = vmatpush1.msra.mxu0 %v1633_v5  ;;  %v1653_v5 = vld [vmem:[%s3142_s4 + $0x500] sm:$0xff]  ;;  %1197 = vmatpush2.msra.mxu1 %v1588_v4  ;;  %v974_v4 = vmax.f32 %v2445_v20, %v2861_v41 }
 0x38c   :  { %1309 = vmatprep.subr.mxu0 %v1632_v6 }
 0x38d   :  { %1310 = vmatpush1.msra.mxu0 %v1631_v7 }
 0x38e   :  { %1311 = vmatprep.subr.mxu0 %v1630_v8 }
 0x38f   :  { %1312 = vmatpush1.msra.mxu0 %v1629_v9 }
 0x390   :  { %1313 = vmatprep.subr.mxu0 %v1628_v10 }
 0x391   :  { %1314 = vmatpush1.msra.mxu0 %v1627_v11 }
 0x392   :  { %1315 = vmatprep.subr.mxu0 %v1626_v12 }
 0x393   :  { %1316 = vmatpush1.msra.mxu0 %v1625_v14 }
 0x394   :  { %1317 = vmatprep.subr.mxu0 %v1624_v15 }
 0x395   :  { %1318 = vmatpush1.msra.mxu0 %v1623_v16 }
 0x396   :  { %1319 = vmatprep.subr.mxu0 %v1622_v17 }
 0x397   :  { %1320 = vmatpush1.msra.mxu0 %v1621_v18 }
 0x398   :  { %1321 = vmatprep.subr.mxu0 %v1684_v21 }
 0x399   :  { %1322 = vmatpush2.msra.mxu0 %v1683_v25 }
 0x39a   :  { %1323 = vmatprep.subr.mxu0 %v1682_v26 }
 0x39b   :  { %1324 = vmatpush2.msra.mxu0 %v1681_v27 }
 0x39c   :  { %1325 = vmatprep.subr.mxu0 %v1680_v28 }
 0x39d   :  { %1326 = vmatpush2.msra.mxu0 %v1679_v31 }
 0x39e   :  { %1327 = vmatprep.subr.mxu0 %v1678_v32 }
 0x39f   :  { %1328 = vmatpush2.msra.mxu0 %v1677_v13 }
 0x3a0   :  { %1329 = vmatprep.subr.mxu0 %v1676_v33 }
 0x3a1   :  { %1330 = vmatpush2.msra.mxu0 %v1675_v35 }
 0x3a2   :  { %1331 = vmatprep.subr.mxu0 %v1674_v37 }
 0x3a3   :  { %1332 = vmatpush2.msra.mxu0 %v1673_v19 }
 0x3a4   :  { %1333 = vmatprep.subr.mxu0 %v1672_v38 }
 0x3a5   :  { %1334 = vmatpush2.msra.mxu0 %v1671_v39 }
 0x3a6   :  { %1335 = vmatprep.subr.mxu0 %v1670_v40 }
 0x3a7   :  { %1336 = vmatpush2.msra.mxu0 %v1669_v43 }
 0x3a8   :  { %1337 = vmatprep.subr.mxu0 %v1668_v48  ;;  %v1620_v48 = vld [vmem:[%s3144_s5 + $0x4] sm:$0x3] }
 0x3a9   :  { %1338 = vmatpush2.msra.mxu0 %v1667_v49 }
 0x3aa   :  { %1339 = vmatprep.subr.mxu0 %v1666_v50  ;;  %v1127_v50 = vrot.slane %v1620_v48, %v2431_v42 }
 0x3ab   :  { %1340 = vmatpush2.msra.mxu0 %v1665_v51  ;;  %v1131_v51 = vrot.slane %v1620_v48, %v2436_v44 }
 0x3ac   :  { %1341 = vmatprep.subr.mxu0 %v1664_v52 }
 0x3ad   :  { %1342 = vmatpush2.msra.mxu0 %v1663_v53 }
 0x3ae   :  { %1343 = vmatprep.subr.mxu0 %v1662_v54 }
 0x3af   :  { %1344 = vmatpush2.msra.mxu0 %v1661_v55  ;;  %v971_v55 = vmax.f32 %v2453_v24, %v2869_v47 }
 0x3b0   :  { %1345 = vmatprep.subr.mxu0 %v1660_v56 }
 0x3b1   :  { %1346 = vmatpush2.msra.mxu0 %v1659_v3 }
 0x3b2   :  { %1347 = vmatprep.subr.mxu0 %v1658_v58 }
 0x3b3   :  { %1348 = vmatpush2.msra.mxu0 %v1657_v60 }
 0x3b4   :  { %1349 = vmatprep.subr.mxu0 %v1656_v62 }
 0x3b5   :  { %1350 = vmatpush2.msra.mxu0 %v1655_v0 }
 0x3b6   :  { %1351 = vmatprep.subr.mxu0 %v1654_v2 }
 0x3b7   :  { %1352 = vmatpush2.msra.mxu0 %v1653_v5  ;;  %v1743_v5 = vld [vmem:[%s3138_s0 + $0x70] sm:$0xff] }
 0x438   :  { %v1041_v6 = vpop.f32.mrf.mxu0 }
 0x439   :  { %v1052_v9 = vadd.f32 %v1041_v6, %v2244_v29  ;;  %v1744_v6 = vld [vmem:[%s3138_s0 + $0x78] sm:$0xff] }
 0x43a   :  { %v1043_v7 = vpop.f32.mrf.mxu0 }
 0x43b   :  { %v1053_v8 = vadd.f32 %v1043_v7, %v2246_v30  ;;  %v1685_v30 = vld [vmem:[%s3143_s6 + $0x4] sm:$0x3] }
 0x43c   :  { %v1047_v10 = vpop.f32.mrf.mxu0  ;;  %v1282_v29 = vrot.slane %v1685_v30, %v2431_v42  ;;  %v1286_v15 = vrot.slane %v1685_v30, %v2436_v44  ;;  %v973_v42 = vmax.f32 %v2447_v22, %v2863_v45  ;;  %v1741_v44 = vld [vmem:[%s3138_s0 + $0x60] sm:$0xff]  ;;  %v1742_v22 = vld [vmem:[%s3138_s0 + $0x68] sm:$0xff] }
 0x43d   :  { %1198 = vmatprep.mubr.f32.mxu1 %v1053_v8  ;;  %1353 = vmatprep.mubr.f32.mxu0 %v1053_v8  ;;  %v1054_v14 = vadd.f32 %v1047_v10, %v2250_v34 }
 0x43e   :  { %v1049_v11 = vpop.f32.mrf.mxu0  ;;  %1199 = vmatmul.mubr.f32.vlgmr.msra.gmra.mxu1 %v1052_v9  ;;  %1354 = vmatmul.mubr.f32.vlgmr.msra.gmra.mxu0 %v1052_v9 }
 0x43f   :  { %v1055_v12 = vadd.f32 %v1049_v11, %v2252_v36 }
 0x441   :  { %1204 = vmatprep.mubr.f32.mxu1 %v1055_v12  ;;  %1359 = vmatprep.mubr.f32.mxu0 %v1055_v12 }
 0x442   :  { %1205 = vmatmul.mubr.f32.gmra.mxu1 %v1054_v14  ;;  %1360 = vmatmul.mubr.f32.gmra.mxu0 %v1054_v14 }
 0x4fe   :  { %v1355_v16 = vpop.f32.mrf.mxu0  ;;  %v1200_v40 = vpop.f32.mrf.mxu1 }
 0x4ff   :  { %v1356_v17 = vadd.f32 %v1355_v16, %v1282_v29  ;;  %v1201_v53 = vadd.f32 %v1200_v40, %v1127_v50 }
 0x500   :  { %v1357_v18 = vpop.f32.mrf.mxu0  ;;  %v1202_v49 = vpop.f32.mrf.mxu1 }
 0x501   :  { %v1686_v21 = vmul.f32 -1.442695, %v1356_v17  ;;  %v1358_v25 = vadd.f32 %v1357_v18, %v1286_v15  ;;  %v1203_v3 = vadd.f32 %v1202_v49, %v1131_v51 }
 0x502   :  { %v1361_v36 = vpop.f32.mrf.mxu0  ;;  %v1206_v52 = vpop.f32.mrf.mxu1 }
 0x503   :  { %1723 = vpow2.f32 %v1686_v21  ;;  %v1687_v34 = vmul.f32 -1.442695, %v1358_v25  ;;  %v1362_v26 = vadd.f32 %v1361_v36, %v1282_v29  ;;  %v1207_v62 = vadd.f32 %v1206_v52, %v1127_v50 }
 0x504   :  { %v1363_v27 = vpop.f32.mrf.mxu0  ;;  %v1208_v58 = vpop.f32.mrf.mxu1 }
 0x505   :  { %1725 = vpow2.f32 %v1687_v34  ;;  %v1688_v28 = vmul.f32 -1.442695, %v1362_v26  ;;  %v1364_v31 = vadd.f32 %v1363_v27, %v1286_v15  ;;  %v1209_v1 = vadd.f32 %v1208_v58, %v1131_v51 }
 0x507   :  { %1727 = vpow2.f32 %v1688_v28  ;;  %v1689_v32 = vmul.f32 -1.442695, %v1364_v31 }
 0x509   :  { %1729 = vpow2.f32 %v1689_v32 }
 0x510   :  { %v1724_v13 = vpop.eup %1723 }
 0x511   :  { %v1378_v33 = vadd.f32 1.0, %v1724_v13 }
 0x512   :  { %v1726_v35 = vpop.eup %1725 }
 0x513   :  { %1731 = vrcp.f32 %v1378_v33  ;;  %v1379_v37 = vadd.f32 1.0, %v1726_v35 }
 0x514   :  { %v1728_v19 = vpop.eup %1727 }
 0x515   :  { %1733 = vrcp.f32 %v1379_v37  ;;  %v1380_v38 = vadd.f32 1.0, %v1728_v19 }
 0x516   :  { %v1730_v39 = vpop.eup %1729 }
 0x517   :  { %1735 = vrcp.f32 %v1380_v38  ;;  %v1381_v43 = vadd.f32 1.0, %v1730_v39 }
 0x519   :  { %1737 = vrcp.f32 %v1381_v43 }
 0x520   :  { %v1732_v54 = vpop.eup %1731 }
 0x521   :  { %v1390_v56 = vmul.f32 %v1732_v54, %v1201_v53 }
 0x522   :  { %v1734_v57 = vpop.eup %1733 }
 0x523   :  { %v1394_v60 = vmax.f32 %v971_v55, %v1390_v56  ;;  %v1391_v61 = vmul.f32 %v1734_v57, %v1203_v3 }
 0x524   :  { %v1736_v63 = vpop.eup %1735 }
 0x525   :  { %v1398_v0 = vadd.f32 %v1741_v44, %v1394_v60  ;;  %v1395_v24 = vmax.f32 %v972_v59, %v1391_v61  ;;  %v1392_v47 = vmul.f32 %v1736_v63, %v1207_v62 }
 0x526   :  { %v1738_v2 = vpop.eup %1737 }
 0x527   :  { %1402 = vst [vmem:[%s3145_s7] sm:$0xff] %v1398_v0  ;;  %v1399_v23 = vadd.f32 %v1742_v22, %v1395_v24  ;;  %v1396_v45 = vmax.f32 %v973_v42, %v1392_v47  ;;  %v1393_v46 = vmul.f32 %v1738_v2, %v1209_v1 }
 0x529   :  { %1403 = vst [vmem:[%s3145_s7 + $0x8] sm:$0xff] %v1399_v23  ;;  %v1400_v20 = vadd.f32 %v1743_v5, %v1396_v45  ;;  %v1397_v41 = vmax.f32 %v974_v4, %v1393_v46 }
 0x52b   :  { %1404 = vst [vmem:[%s3145_s7 + $0x10] sm:$0xff] %v1400_v20  ;;  %v1401_v7 = vadd.f32 %v1744_v6, %v1397_v41 }
 0x52d   :  { %1405 = vst [vmem:[%s3145_s7 + $0x18] sm:$0xff] %v1401_v7 }

</bundles_post_ra>
